<compile_context>
chip_gen: v7x
topology: tpu7x:2x2x1
jax: 0.10.0
libtpu: 0.0.40
codegen_flags: <defaults>
</compile_context>

<pallas_src>
import jax
import jax.numpy as jnp
import numpy as np
from jax.experimental import pallas as pl
from jax.experimental.pallas import tpu as pltpu

# TODO(synk): Activation.LRELU slope is not specified in the snippet; using
# 0.2 (the standard SN-PatchGAN / DeepFill-v2 convention).
LRELU_SLOPE = 0.2


def _round_up(x, m):
    return ((x + m - 1) // m) * m


# ---------------------------------------------------------------------------
# Host-side, one-time weight packing (review item: pre-pack at setup time).
# ---------------------------------------------------------------------------
def pack_conv_layer(w_oihw, b, H, W):
    """Fold kw taps + W padding + channels of a 5x5/s2/p2 conv into 5 matrices.

    Returns:
      w_big:     (5, Kpad, Wo*Cout) bf16 with
                 w_big[kh, w*Cin+ci, wo*Cout+co] = w[co, ci, kh, w-2*wo+2]
      bias_lane: (1, Wo*Cout) f32 with bias_lane[0, wo*Cout+co] = b[co]
    """
    w_np = np.asarray(jax.device_get(w_oihw), dtype=np.float32)
    b_np = np.asarray(jax.device_get(b), dtype=np.float32)
    c_out, c_in, _, _ = w_np.shape
    w_out = W // 2
    k = W * c_in
    k_pad = max(128, _round_up(k, 128))       # lane-aligned K (review item)
    n_out = w_out * c_out
    big = np.zeros((5, k_pad, n_out), np.float32)
    for kh in range(5):
        for wo in range(w_out):
            for kw in range(5):
                w_in = 2 * wo + kw - 2
                if 0 <= w_in < W:
                    big[kh,
                        w_in * c_in:(w_in + 1) * c_in,
                        wo * c_out:(wo + 1) * c_out] = w_np[:, :, kh, kw].T
    bias_lane = np.tile(b_np, w_out).reshape(1, n_out)
    return (jnp.asarray(big, dtype=jnp.bfloat16),
            jnp.asarray(bias_lane, dtype=jnp.float32))


def pack_params(params, H, W):
    packed = []
    h, w = H, W
    for (wgt, b) in params:
        packed.append(pack_conv_layer(wgt, b, h, w))
        h, w = h // 2, w // 2
    return packed


# ---------------------------------------------------------------------------
# Fused forward builder.
# ---------------------------------------------------------------------------
def _layer_dims(H, W, chans):
    dims = []
    h, w = H, W
    for c_in, c_out in chans:
        assert h % 2 == 0 and w % 2 == 0, "each conv layer needs even H, W"
        d = {"H": h, "W": w, "Ho": h // 2, "Wo": w // 2,
             "Cin": c_in, "Cout": c_out}
        d["K"] = w * c_in
        d["Kpad"] = max(128, _round_up(d["K"], 128))
        d["Nout"] = d["Wo"] * c_out
        dims.append(d)
        h, w = d["Ho"], d["Wo"]
    return dims


def _make_parity_input(x_nchw, d0):
    """Split the NCHW input into H-parity (even/odd), H-padded 2-D matrices.

    Row layout: (padded_half_row j, batch n); lane layout: (w, cin), padded to
    Kpad lanes.  e0 row-group j holds padded row 2j (= input row 2j-2),
    o0 row-group j holds padded row 2j+1 (= input row 2j-1).
    """
    N = x_nchw.shape[0]
    H, W, c_in, k_pad = d0["H"], d0["W"], d0["Cin"], d0["Kpad"]
    xs = jnp.transpose(x_nchw, (0, 2, 3, 1)).reshape(N, H, W * c_in)
    zrow = jnp.zeros((1, N, W * c_in), xs.dtype)

    def build(rows_nhw):                                  # (N, H/2, W*Cin)
        r = jnp.transpose(rows_nhw, (1, 0, 2))            # (H/2, N, W*Cin)
        r = jnp.concatenate([zrow, r, zrow], axis=0)      # H padding (2/side)
        r = r.reshape((H // 2 + 2) * N, W * c_in)
        r = jnp.pad(r, ((0, 0), (0, k_pad - W * c_in)))
        return r.astype(jnp.bfloat16)

    return build(xs[:, 0::2, :]), build(xs[:, 1::2, :])


def build_fused_forward(N, H, W, chans):
    dims = _layer_dims(H, W, chans)
    n_layers = len(dims)
    d0, d_last = dims[0], dims[-1]

    # ------------------------------- kernel --------------------------------
    def kernel(*refs):
        n_in = 2 + 2 * n_layers
        e_ref, o_ref = refs[0], refs[1]
        w_refs = [refs[2 + 2 * i] for i in range(n_layers)]
        b_refs = [refs[3 + 2 * i] for i in range(n_layers)]
        out_ref = refs[n_in]
        scratch = refs[n_in + 1:]

        # Zero the parity scratches once; their border row-groups are the
        # spatial (H) zero padding of the next layer's input.
        for r in scratch:
            r[...] = jnp.zeros(r.shape, r.dtype)

        for li, d in enumerate(dims):
            ho_n = d["Ho"] * N
            acc = None
            for kh in range(5):                           # 5 kh taps
                src = e_ref if kh % 2 == 0 else o_ref     # H-parity of the tap
                start = (kh // 2) * N                     # contiguous window
                lhs = src[start:start + ho_n, :]          # (Ho*N, Kpad) bf16
                part = jnp.dot(lhs, w_refs[li][kh],
                               preferred_element_type=jnp.float32)
                acc = part if acc is None else acc + part
            acc = acc + b_refs[li][...]                   # f32 bias
            act = jnp.maximum(acc, LRELU_SLOPE * acc)     # LeakyReLU

            if li + 1 < n_layers:
                e_next = scratch[2 * li]
                o_next = scratch[2 * li + 1]
                lanes = d["Nout"]
                # Output row ho becomes padded row ho+2 of the next layer's
                # input -> parity ho%2, parity-local row-group ho//2 + 1.
                for ho in range(d["Ho"]):
                    dst = e_next if ho % 2 == 0 else o_next
                    j = ho // 2 + 1
                    dst[j * N:(j + 1) * N, 0:lanes] = (
                        act[ho * N:(ho + 1) * N, :].astype(dst.dtype))
                e_ref, o_ref = e_next, o_next
            else:
                out_ref[...] = act.astype(out_ref.dtype)

    # ------------------------------- specs ---------------------------------
    rows0 = (d0["H"] // 2 + 2) * N
    in_specs = [
        pl.BlockSpec((rows0, d0["Kpad"]), lambda i: (0, 0)),    # e0
        pl.BlockSpec((rows0, d0["Kpad"]), lambda i: (0, 0)),    # o0
    ]
    for d in dims:
        in_specs.append(
            pl.BlockSpec((5, d["Kpad"], d["Nout"]), lambda i: (0, 0, 0)))
        in_specs.append(pl.BlockSpec((1, d["Nout"]), lambda i: (0, 0)))

    out_rows = d_last["Ho"] * N
    out_specs = pl.BlockSpec((out_rows, d_last["Nout"]), lambda i: (0, 0))
    out_shape = jax.ShapeDtypeStruct((out_rows, d_last["Nout"]), jnp.float32)

    scratch_shapes = []
    for li in range(n_layers - 1):
        rows = (dims[li]["Ho"] // 2 + 2) * N
        lanes = dims[li + 1]["Kpad"]
        scratch_shapes.append(pltpu.VMEM((rows, lanes), jnp.bfloat16))  # even
        scratch_shapes.append(pltpu.VMEM((rows, lanes), jnp.bfloat16))  # odd

    flops = sum(2 * (d["Ho"] * N) * d["Kpad"] * d["Nout"] * 5 for d in dims)
    bytes_acc = 2 * rows0 * d0["Kpad"] * 2
    bytes_acc += sum(5 * d["Kpad"] * d["Nout"] * 2 + 4 * d["Nout"] for d in dims)
    bytes_acc += out_rows * d_last["Nout"] * 4
    ce = pl.CostEstimate(flops=flops, transcendentals=0,
                         bytes_accessed=bytes_acc)

    call = pl.pallas_call(
        kernel,
        out_shape=out_shape,
        grid_spec=pltpu.PrefetchScalarGridSpec(
            num_scalar_prefetch=0,
            grid=(1,),
            in_specs=in_specs,
            out_specs=out_specs,
            scratch_shapes=scratch_shapes),
        compiler_params=pltpu.CompilerParams(
            dimension_semantics=("arbitrary",)),
        cost_estimate=ce,
    )

    # ------------------- thin host-side wrapper (cheap glue) ----------------
    def forward(x_nchw, packed):
        e0, o0 = _make_parity_input(x_nchw, d0)
        flat = []
        for w_big, bias_lane in packed:
            flat.append(w_big)
            flat.append(bias_lane)
        out2d = call(e0, o0, *flat)                 # rows (ho, n), lanes (wo, c)
        y = out2d.reshape(d_last["Ho"], N, d_last["Wo"], d_last["Cout"])
        y = jnp.transpose(y, (1, 3, 0, 2))          # (N, C, Ho, Wo)
        return y.reshape(N, -1)                     # nn.Flatten() (NCHW order)

    return forward, dims


# --------------------------- spectral norm (setup) ---------------------------
def spectral_normalize(w_oihw, key, n_iter=5, eps=1e-12):
    """SpectralNorm applied at parameter-setup time (power iteration in JAX).

    TODO(synk): torch.nn.utils.spectral_norm does one power iteration per
    forward with a persistent u buffer; here it is baked into the weights.
    """
    cout = w_oihw.shape[0]
    wmat = w_oihw.reshape(cout, -1)
    u = jax.random.normal(key, (cout,), dtype=jnp.float32)
    u = u / (jnp.linalg.norm(u) + eps)
    v = None
    for _ in range(n_iter):
        v = wmat.T @ u
        v = v / (jnp.linalg.norm(v) + eps)
        u = wmat @ v
        u = u / (jnp.linalg.norm(u) + eps)
    sigma = u @ (wmat @ v)
    return w_oihw / sigma


# -------------------------------- reference ----------------------------------
def reference_forward(x_nchw, params, neg_slope=LRELU_SLOPE):
    """Pure-JAX f32 reference (lax.conv) for a correctness sanity check."""
    x = jnp.transpose(x_nchw, (0, 2, 3, 1))
    for (w, b) in params:
        w_hwio = jnp.transpose(w, (2, 3, 1, 0))
        x = jax.lax.conv_general_dilated(
            x, w_hwio, window_strides=(2, 2), padding=((2, 2), (2, 2)),
            dimension_numbers=("NHWC", "HWIO", "NHWC"))
        x = x + b
        x = jnp.where(x >= 0, x, neg_slope * x)
    x = jnp.transpose(x, (0, 3, 1, 2))
    return x.reshape(x.shape[0], -1)


# --------------------------------- params ------------------------------------
def make_params(key, latent_channels=64):
    min_channels = 32
    c1 = max(latent_channels // 4, min_channels)          # 32
    c2 = min(c1 * 2, latent_channels)                     # 64
    c3 = min(c2 * 2, latent_channels)                     # 64
    c4 = c3                                               # 64
    chans = [(1, c1), (c1, c2), (c2, c3), (c3, c4)]
    params = []
    for cin, cout in chans:
        key, kw, kb, ku = jax.random.split(key, 4)
        fan_in = cin * 25
        bound = 1.0 / (fan_in ** 0.5)                     # PyTorch-like init
        w = jax.random.uniform(kw, (cout, cin, 5, 5), minval=-bound,
                               maxval=bound, dtype=jnp.float32)
        b = jax.random.uniform(kb, (cout,), minval=-bound,
                               maxval=bound, dtype=jnp.float32)
        w = spectral_normalize(w, ku)
        params.append((w, b))
    return key, params


if __name__ == "__main__":
    key = jax.random.PRNGKey(0)
    key, params = make_params(key, latent_channels=64)

    N, H, W = 2, 16, 16
    chans = [(p[0].shape[1], p[0].shape[0]) for p in params]
    packed = pack_params(params, H, W)          # packed ONCE, outside forward

    forward, _ = build_fused_forward(N, H, W, chans)
    fwd = jax.jit(forward)

    key, kx = jax.random.split(key)
    x = jax.random.normal(kx, (N, 1, H, W), dtype=jnp.float32)   # NCHW

    y = jax.block_until_ready(fwd(x, packed))

    # 16 -> 8 -> 4 -> 2 -> 1 spatial, 64 channels -> flatten => (2, 64)
    assert y.shape == (N, 64), y.shape
    assert bool(jnp.all(jnp.isfinite(y)))

    # Sanity-check against a pure-JAX f32 reference (bf16 MXU tolerance).
    y_ref = jax.block_until_ready(jax.jit(reference_forward)(x, params))
    max_err = float(jnp.max(jnp.abs(y - y_ref)))
    assert max_err < 5e-2, max_err

    print("KERNEL_OK")
</pallas_src>

<mosaic_0001>
module attributes {stable_mosaic.version = 11 : i64} {
  func.func @kernel(%arg0: i32, %arg1: memref<20x128xbf16, #tpu.memory_space<vmem>>, %arg2: memref<20x128xbf16, #tpu.memory_space<vmem>>, %arg3: memref<5x128x256xbf16, #tpu.memory_space<vmem>>, %arg4: memref<1x256xf32, #tpu.memory_space<vmem>>, %arg5: memref<5x256x256xbf16, #tpu.memory_space<vmem>>, %arg6: memref<1x256xf32, #tpu.memory_space<vmem>>, %arg7: memref<5x256x128xbf16, #tpu.memory_space<vmem>>, %arg8: memref<1x128xf32, #tpu.memory_space<vmem>>, %arg9: memref<5x128x64xbf16, #tpu.memory_space<vmem>>, %arg10: memref<1x64xf32, #tpu.memory_space<vmem>>, %arg11: memref<2x64xf32, #tpu.memory_space<vmem>>, %arg12: memref<12x256xbf16, #tpu.memory_space<vmem>>, %arg13: memref<12x256xbf16, #tpu.memory_space<vmem>>, %arg14: memref<8x256xbf16, #tpu.memory_space<vmem>>, %arg15: memref<8x256xbf16, #tpu.memory_space<vmem>>, %arg16: memref<6x128xbf16, #tpu.memory_space<vmem>>, %arg17: memref<6x128xbf16, #tpu.memory_space<vmem>>) attributes {dimension_semantics = [#tpu.dimension_semantics<arbitrary>], iteration_bounds = array<i64: 1>, scalar_prefetch = 0 : i64, scratch_operands = 6 : i64, tpu.core_type = #tpu.core_type<tc>, window_params = [{pipeline_mode = #tpu.pipeline_mode<synchronous>, transform_indices = @transform_0, window_bounds = array<i64: 20, 128>}, {pipeline_mode = #tpu.pipeline_mode<synchronous>, transform_indices = @transform_1, window_bounds = array<i64: 20, 128>}, {pipeline_mode = #tpu.pipeline_mode<synchronous>, transform_indices = @transform_2, window_bounds = array<i64: 5, 128, 256>}, {pipeline_mode = #tpu.pipeline_mode<synchronous>, transform_indices = @transform_3, window_bounds = array<i64: 1, 256>}, {pipeline_mode = #tpu.pipeline_mode<synchronous>, transform_indices = @transform_4, window_bounds = array<i64: 5, 256, 256>}, {pipeline_mode = #tpu.pipeline_mode<synchronous>, transform_indices = @transform_5, window_bounds = array<i64: 1, 256>}, {pipeline_mode = #tpu.pipeline_mode<synchronous>, transform_indices = @transform_6, window_bounds = array<i64: 5, 256, 128>}, {pipeline_mode = #tpu.pipeline_mode<synchronous>, transform_indices = @transform_7, window_bounds = array<i64: 1, 128>}, {pipeline_mode = #tpu.pipeline_mode<synchronous>, transform_indices = @transform_8, window_bounds = array<i64: 5, 128, 64>}, {pipeline_mode = #tpu.pipeline_mode<synchronous>, transform_indices = @transform_9, window_bounds = array<i64: 1, 64>}, {pipeline_mode = #tpu.pipeline_mode<synchronous>, transform_indices = @transform_10, window_bounds = array<i64: 2, 64>}]} {
    %cst = arith.constant 0.000000e+00 : bf16
    %0 = vector.broadcast %cst : bf16 to vector<12x256xbf16>
    %c0 = arith.constant 0 : index
    %c0_0 = arith.constant 0 : index
    %1 = vector.load %arg12[%c0, %c0_0] : memref<12x256xbf16, #tpu.memory_space<vmem>>, vector<12x256xbf16>
    tpu.vector_store %arg12[%c0, %c0_0], %0 {strides = array<i32>} : memref<12x256xbf16, #tpu.memory_space<vmem>>, vector<12x256xbf16>,
    %cst_1 = arith.constant 0.000000e+00 : bf16
    %2 = vector.broadcast %cst_1 : bf16 to vector<12x256xbf16>
    %c0_2 = arith.constant 0 : index
    %c0_3 = arith.constant 0 : index
    %3 = vector.load %arg13[%c0_2, %c0_3] : memref<12x256xbf16, #tpu.memory_space<vmem>>, vector<12x256xbf16>
    tpu.vector_store %arg13[%c0_2, %c0_3], %2 {strides = array<i32>} : memref<12x256xbf16, #tpu.memory_space<vmem>>, vector<12x256xbf16>,
    %cst_4 = arith.constant 0.000000e+00 : bf16
    %4 = vector.broadcast %cst_4 : bf16 to vector<8x256xbf16>
    %c0_5 = arith.constant 0 : index
    %c0_6 = arith.constant 0 : index
    %5 = vector.load %arg14[%c0_5, %c0_6] : memref<8x256xbf16, #tpu.memory_space<vmem>>, vector<8x256xbf16>
    tpu.vector_store %arg14[%c0_5, %c0_6], %4 {strides = array<i32>} : memref<8x256xbf16, #tpu.memory_space<vmem>>, vector<8x256xbf16>,
    %cst_7 = arith.constant 0.000000e+00 : bf16
    %6 = vector.broadcast %cst_7 : bf16 to vector<8x256xbf16>
    %c0_8 = arith.constant 0 : index
    %c0_9 = arith.constant 0 : index
    %7 = vector.load %arg15[%c0_8, %c0_9] : memref<8x256xbf16, #tpu.memory_space<vmem>>, vector<8x256xbf16>
    tpu.vector_store %arg15[%c0_8, %c0_9], %6 {strides = array<i32>} : memref<8x256xbf16, #tpu.memory_space<vmem>>, vector<8x256xbf16>,
    %cst_10 = arith.constant 0.000000e+00 : bf16
    %8 = vector.broadcast %cst_10 : bf16 to vector<6x128xbf16>
    %c0_11 = arith.constant 0 : index
    %c0_12 = arith.constant 0 : index
    %9 = vector.load %arg16[%c0_11, %c0_12] : memref<6x128xbf16, #tpu.memory_space<vmem>>, vector<6x128xbf16>
    tpu.vector_store %arg16[%c0_11, %c0_12], %8 {strides = array<i32>} : memref<6x128xbf16, #tpu.memory_space<vmem>>, vector<6x128xbf16>,
    %cst_13 = arith.constant 0.000000e+00 : bf16
    %10 = vector.broadcast %cst_13 : bf16 to vector<6x128xbf16>
    %c0_14 = arith.constant 0 : index
    %c0_15 = arith.constant 0 : index
    %11 = vector.load %arg17[%c0_14, %c0_15] : memref<6x128xbf16, #tpu.memory_space<vmem>>, vector<6x128xbf16>
    tpu.vector_store %arg17[%c0_14, %c0_15], %10 {strides = array<i32>} : memref<6x128xbf16, #tpu.memory_space<vmem>>, vector<6x128xbf16>,
    %c0_16 = arith.constant 0 : index
    %c0_17 = arith.constant 0 : index
    %12 = vector.load %arg1[%c0_16, %c0_17] : memref<20x128xbf16, #tpu.memory_space<vmem>>, vector<16x128xbf16>
    %c0_18 = arith.constant 0 : index
    %c0_19 = arith.constant 0 : index
    %c0_20 = arith.constant 0 : index
    %13 = vector.load %arg3[%c0_18, %c0_19, %c0_20] : memref<5x128x256xbf16, #tpu.memory_space<vmem>>, vector<1x128x256xbf16>
    %14 = vector.shape_cast %13 : vector<1x128x256xbf16> to vector<128x256xbf16>
    %cst_21 = arith.constant dense<0.000000e+00> : vector<16x256xf32>
    %15 = tpu.matmul %12, %14, %cst_21 {dimension_numbers = #tpu.dot_dimension_numbers<[1], [0], [0], [1], [0, 0, 1, 1], [], []>} : vector<16x128xbf16>, vector<128x256xbf16>, vector<16x256xf32> -> vector<16x256xf32>
    %c0_22 = arith.constant 0 : index
    %c0_23 = arith.constant 0 : index
    %16 = vector.load %arg2[%c0_22, %c0_23] : memref<20x128xbf16, #tpu.memory_space<vmem>>, vector<16x128xbf16>
    %c1 = arith.constant 1 : index
    %c0_24 = arith.constant 0 : index
    %c0_25 = arith.constant 0 : index
    %17 = vector.load %arg3[%c1, %c0_24, %c0_25] : memref<5x128x256xbf16, #tpu.memory_space<vmem>>, vector<1x128x256xbf16>
    %18 = vector.shape_cast %17 : vector<1x128x256xbf16> to vector<128x256xbf16>
    %cst_26 = arith.constant dense<0.000000e+00> : vector<16x256xf32>
    %19 = tpu.matmul %16, %18, %cst_26 {dimension_numbers = #tpu.dot_dimension_numbers<[1], [0], [0], [1], [0, 0, 1, 1], [], []>} : vector<16x128xbf16>, vector<128x256xbf16>, vector<16x256xf32> -> vector<16x256xf32>
    %20 = arith.addf %15, %19 : vector<16x256xf32>
    %c2 = arith.constant 2 : index
    %c0_27 = arith.constant 0 : index
    %21 = vector.load %arg1[%c2, %c0_27] : memref<20x128xbf16, #tpu.memory_space<vmem>>, vector<16x128xbf16>
    %c2_28 = arith.constant 2 : index
    %c0_29 = arith.constant 0 : index
    %c0_30 = arith.constant 0 : index
    %22 = vector.load %arg3[%c2_28, %c0_29, %c0_30] : memref<5x128x256xbf16, #tpu.memory_space<vmem>>, vector<1x128x256xbf16>
    %23 = vector.shape_cast %22 : vector<1x128x256xbf16> to vector<128x256xbf16>
    %cst_31 = arith.constant dense<0.000000e+00> : vector<16x256xf32>
    %24 = tpu.matmul %21, %23, %cst_31 {dimension_numbers = #tpu.dot_dimension_numbers<[1], [0], [0], [1], [0, 0, 1, 1], [], []>} : vector<16x128xbf16>, vector<128x256xbf16>, vector<16x256xf32> -> vector<16x256xf32>
    %25 = arith.addf %20, %24 : vector<16x256xf32>
    %c2_32 = arith.constant 2 : index
    %c0_33 = arith.constant 0 : index
    %26 = vector.load %arg2[%c2_32, %c0_33] : memref<20x128xbf16, #tpu.memory_space<vmem>>, vector<16x128xbf16>
    %c3 = arith.constant 3 : index
    %c0_34 = arith.constant 0 : index
    %c0_35 = arith.constant 0 : index
    %27 = vector.load %arg3[%c3, %c0_34, %c0_35] : memref<5x128x256xbf16, #tpu.memory_space<vmem>>, vector<1x128x256xbf16>
    %28 = vector.shape_cast %27 : vector<1x128x256xbf16> to vector<128x256xbf16>
    %cst_36 = arith.constant dense<0.000000e+00> : vector<16x256xf32>
    %29 = tpu.matmul %26, %28, %cst_36 {dimension_numbers = #tpu.dot_dimension_numbers<[1], [0], [0], [1], [0, 0, 1, 1], [], []>} : vector<16x128xbf16>, vector<128x256xbf16>, vector<16x256xf32> -> vector<16x256xf32>
    %30 = arith.addf %25, %29 : vector<16x256xf32>
    %c4 = arith.constant 4 : index
    %c0_37 = arith.constant 0 : index
    %31 = vector.load %arg1[%c4, %c0_37] : memref<20x128xbf16, #tpu.memory_space<vmem>>, vector<16x128xbf16>
    %c4_38 = arith.constant 4 : index
    %c0_39 = arith.constant 0 : index
    %c0_40 = arith.constant 0 : index
    %32 = vector.load %arg3[%c4_38, %c0_39, %c0_40] : memref<5x128x256xbf16, #tpu.memory_space<vmem>>, vector<1x128x256xbf16>
    %33 = vector.shape_cast %32 : vector<1x128x256xbf16> to vector<128x256xbf16>
    %cst_41 = arith.constant dense<0.000000e+00> : vector<16x256xf32>
    %34 = tpu.matmul %31, %33, %cst_41 {dimension_numbers = #tpu.dot_dimension_numbers<[1], [0], [0], [1], [0, 0, 1, 1], [], []>} : vector<16x128xbf16>, vector<128x256xbf16>, vector<16x256xf32> -> vector<16x256xf32>
    %35 = arith.addf %30, %34 : vector<16x256xf32>
    %c0_42 = arith.constant 0 : index
    %c0_43 = arith.constant 0 : index
    %36 = vector.load %arg4[%c0_42, %c0_43] : memref<1x256xf32, #tpu.memory_space<vmem>>, vector<1x256xf32>
    %37 = vector.broadcast %36 : vector<1x256xf32> to vector<16x256xf32>
    %38 = arith.addf %35, %37 : vector<16x256xf32>
    %cst_44 = arith.constant 2.000000e-01 : f32
    %39 = vector.broadcast %cst_44 : f32 to vector<16x256xf32>
    %40 = arith.mulf %39, %38 : vector<16x256xf32>
    %41 = arith.maximumf %38, %40 : vector<16x256xf32>
    %42 = vector.extract_strided_slice %41 {offsets = [0, 0], sizes = [2, 256], strides = [1, 1]} : vector<16x256xf32> to vector<2x256xf32>
    %43 = arith.truncf %42 : vector<2x256xf32> to vector<2x256xbf16>
    %c2_45 = arith.constant 2 : index
    %c0_46 = arith.constant 0 : index
    %44 = vector.load %arg12[%c2_45, %c0_46] : memref<12x256xbf16, #tpu.memory_space<vmem>>, vector<2x256xbf16>
    tpu.vector_store %arg12[%c2_45, %c0_46], %43 {strides = array<i32>} : memref<12x256xbf16, #tpu.memory_space<vmem>>, vector<2x256xbf16>,
    %45 = vector.extract_strided_slice %41 {offsets = [2, 0], sizes = [2, 256], strides = [1, 1]} : vector<16x256xf32> to vector<2x256xf32>
    %46 = arith.truncf %45 : vector<2x256xf32> to vector<2x256xbf16>
    %c2_47 = arith.constant 2 : index
    %c0_48 = arith.constant 0 : index
    %47 = vector.load %arg13[%c2_47, %c0_48] : memref<12x256xbf16, #tpu.memory_space<vmem>>, vector<2x256xbf16>
    tpu.vector_store %arg13[%c2_47, %c0_48], %46 {strides = array<i32>} : memref<12x256xbf16, #tpu.memory_space<vmem>>, vector<2x256xbf16>,
    %48 = vector.extract_strided_slice %41 {offsets = [4, 0], sizes = [2, 256], strides = [1, 1]} : vector<16x256xf32> to vector<2x256xf32>
    %49 = arith.truncf %48 : vector<2x256xf32> to vector<2x256xbf16>
    %c4_49 = arith.constant 4 : index
    %c0_50 = arith.constant 0 : index
    %50 = vector.load %arg12[%c4_49, %c0_50] : memref<12x256xbf16, #tpu.memory_space<vmem>>, vector<2x256xbf16>
    tpu.vector_store %arg12[%c4_49, %c0_50], %49 {strides = array<i32>} : memref<12x256xbf16, #tpu.memory_space<vmem>>, vector<2x256xbf16>,
    %51 = vector.extract_strided_slice %41 {offsets = [6, 0], sizes = [2, 256], strides = [1, 1]} : vector<16x256xf32> to vector<2x256xf32>
    %52 = arith.truncf %51 : vector<2x256xf32> to vector<2x256xbf16>
    %c4_51 = arith.constant 4 : index
    %c0_52 = arith.constant 0 : index
    %53 = vector.load %arg13[%c4_51, %c0_52] : memref<12x256xbf16, #tpu.memory_space<vmem>>, vector<2x256xbf16>
    tpu.vector_store %arg13[%c4_51, %c0_52], %52 {strides = array<i32>} : memref<12x256xbf16, #tpu.memory_space<vmem>>, vector<2x256xbf16>,
    %54 = vector.extract_strided_slice %41 {offsets = [8, 0], sizes = [2, 256], strides = [1, 1]} : vector<16x256xf32> to vector<2x256xf32>
    %55 = arith.truncf %54 : vector<2x256xf32> to vector<2x256xbf16>
    %c6 = arith.constant 6 : index
    %c0_53 = arith.constant 0 : index
    %56 = vector.load %arg12[%c6, %c0_53] : memref<12x256xbf16, #tpu.memory_space<vmem>>, vector<2x256xbf16>
    tpu.vector_store %arg12[%c6, %c0_53], %55 {strides = array<i32>} : memref<12x256xbf16, #tpu.memory_space<vmem>>, vector<2x256xbf16>,
    %57 = vector.extract_strided_slice %41 {offsets = [10, 0], sizes = [2, 256], strides = [1, 1]} : vector<16x256xf32> to vector<2x256xf32>
    %58 = arith.truncf %57 : vector<2x256xf32> to vector<2x256xbf16>
    %c6_54 = arith.constant 6 : index
    %c0_55 = arith.constant 0 : index
    %59 = vector.load %arg13[%c6_54, %c0_55] : memref<12x256xbf16, #tpu.memory_space<vmem>>, vector<2x256xbf16>
    tpu.vector_store %arg13[%c6_54, %c0_55], %58 {strides = array<i32>} : memref<12x256xbf16, #tpu.memory_space<vmem>>, vector<2x256xbf16>,
    %60 = vector.extract_strided_slice %41 {offsets = [12, 0], sizes = [2, 256], strides = [1, 1]} : vector<16x256xf32> to vector<2x256xf32>
    %61 = arith.truncf %60 : vector<2x256xf32> to vector<2x256xbf16>
    %c8 = arith.constant 8 : index
    %c0_56 = arith.constant 0 : index
    %62 = vector.load %arg12[%c8, %c0_56] : memref<12x256xbf16, #tpu.memory_space<vmem>>, vector<2x256xbf16>
    tpu.vector_store %arg12[%c8, %c0_56], %61 {strides = array<i32>} : memref<12x256xbf16, #tpu.memory_space<vmem>>, vector<2x256xbf16>,
    %63 = vector.extract_strided_slice %41 {offsets = [14, 0], sizes = [2, 256], strides = [1, 1]} : vector<16x256xf32> to vector<2x256xf32>
    %64 = arith.truncf %63 : vector<2x256xf32> to vector<2x256xbf16>
    %c8_57 = arith.constant 8 : index
    %c0_58 = arith.constant 0 : index
    %65 = vector.load %arg13[%c8_57, %c0_58] : memref<12x256xbf16, #tpu.memory_space<vmem>>, vector<2x256xbf16>
    tpu.vector_store %arg13[%c8_57, %c0_58], %64 {strides = array<i32>} : memref<12x256xbf16, #tpu.memory_space<vmem>>, vector<2x256xbf16>,
    %c0_59 = arith.constant 0 : index
    %c0_60 = arith.constant 0 : index
    %66 = vector.load %arg12[%c0_59, %c0_60] : memref<12x256xbf16, #tpu.memory_space<vmem>>, vector<8x256xbf16>
    %c0_61 = arith.constant 0 : index
    %c0_62 = arith.constant 0 : index
    %c0_63 = arith.constant 0 : index
    %67 = vector.load %arg5[%c0_61, %c0_62, %c0_63] : memref<5x256x256xbf16, #tpu.memory_space<vmem>>, vector<1x256x256xbf16>
    %68 = vector.shape_cast %67 : vector<1x256x256xbf16> to vector<256x256xbf16>
    %cst_64 = arith.constant dense<0.000000e+00> : vector<8x256xf32>
    %69 = tpu.matmul %66, %68, %cst_64 {dimension_numbers = #tpu.dot_dimension_numbers<[1], [0], [0], [1], [0, 0, 1, 1], [], []>} : vector<8x256xbf16>, vector<256x256xbf16>, vector<8x256xf32> -> vector<8x256xf32>
    %c0_65 = arith.constant 0 : index
    %c0_66 = arith.constant 0 : index
    %70 = vector.load %arg13[%c0_65, %c0_66] : memref<12x256xbf16, #tpu.memory_space<vmem>>, vector<8x256xbf16>
    %c1_67 = arith.constant 1 : index
    %c0_68 = arith.constant 0 : index
    %c0_69 = arith.constant 0 : index
    %71 = vector.load %arg5[%c1_67, %c0_68, %c0_69] : memref<5x256x256xbf16, #tpu.memory_space<vmem>>, vector<1x256x256xbf16>
    %72 = vector.shape_cast %71 : vector<1x256x256xbf16> to vector<256x256xbf16>
    %cst_70 = arith.constant dense<0.000000e+00> : vector<8x256xf32>
    %73 = tpu.matmul %70, %72, %cst_70 {dimension_numbers = #tpu.dot_dimension_numbers<[1], [0], [0], [1], [0, 0, 1, 1], [], []>} : vector<8x256xbf16>, vector<256x256xbf16>, vector<8x256xf32> -> vector<8x256xf32>
    %74 = arith.addf %69, %73 : vector<8x256xf32>
    %c2_71 = arith.constant 2 : index
    %c0_72 = arith.constant 0 : index
    %75 = vector.load %arg12[%c2_71, %c0_72] : memref<12x256xbf16, #tpu.memory_space<vmem>>, vector<8x256xbf16>
    %c2_73 = arith.constant 2 : index
    %c0_74 = arith.constant 0 : index
    %c0_75 = arith.constant 0 : index
    %76 = vector.load %arg5[%c2_73, %c0_74, %c0_75] : memref<5x256x256xbf16, #tpu.memory_space<vmem>>, vector<1x256x256xbf16>
    %77 = vector.shape_cast %76 : vector<1x256x256xbf16> to vector<256x256xbf16>
    %cst_76 = arith.constant dense<0.000000e+00> : vector<8x256xf32>
    %78 = tpu.matmul %75, %77, %cst_76 {dimension_numbers = #tpu.dot_dimension_numbers<[1], [0], [0], [1], [0, 0, 1, 1], [], []>} : vector<8x256xbf16>, vector<256x256xbf16>, vector<8x256xf32> -> vector<8x256xf32>
    %79 = arith.addf %74, %78 : vector<8x256xf32>
    %c2_77 = arith.constant 2 : index
    %c0_78 = arith.constant 0 : index
    %80 = vector.load %arg13[%c2_77, %c0_78] : memref<12x256xbf16, #tpu.memory_space<vmem>>, vector<8x256xbf16>
    %c3_79 = arith.constant 3 : index
    %c0_80 = arith.constant 0 : index
    %c0_81 = arith.constant 0 : index
    %81 = vector.load %arg5[%c3_79, %c0_80, %c0_81] : memref<5x256x256xbf16, #tpu.memory_space<vmem>>, vector<1x256x256xbf16>
    %82 = vector.shape_cast %81 : vector<1x256x256xbf16> to vector<256x256xbf16>
    %cst_82 = arith.constant dense<0.000000e+00> : vector<8x256xf32>
    %83 = tpu.matmul %80, %82, %cst_82 {dimension_numbers = #tpu.dot_dimension_numbers<[1], [0], [0], [1], [0, 0, 1, 1], [], []>} : vector<8x256xbf16>, vector<256x256xbf16>, vector<8x256xf32> -> vector<8x256xf32>
    %84 = arith.addf %79, %83 : vector<8x256xf32>
    %c4_83 = arith.constant 4 : index
    %c0_84 = arith.constant 0 : index
    %85 = vector.load %arg12[%c4_83, %c0_84] : memref<12x256xbf16, #tpu.memory_space<vmem>>, vector<8x256xbf16>
    %c4_85 = arith.constant 4 : index
    %c0_86 = arith.constant 0 : index
    %c0_87 = arith.constant 0 : index
    %86 = vector.load %arg5[%c4_85, %c0_86, %c0_87] : memref<5x256x256xbf16, #tpu.memory_space<vmem>>, vector<1x256x256xbf16>
    %87 = vector.shape_cast %86 : vector<1x256x256xbf16> to vector<256x256xbf16>
    %cst_88 = arith.constant dense<0.000000e+00> : vector<8x256xf32>
    %88 = tpu.matmul %85, %87, %cst_88 {dimension_numbers = #tpu.dot_dimension_numbers<[1], [0], [0], [1], [0, 0, 1, 1], [], []>} : vector<8x256xbf16>, vector<256x256xbf16>, vector<8x256xf32> -> vector<8x256xf32>
    %89 = arith.addf %84, %88 : vector<8x256xf32>
    %c0_89 = arith.constant 0 : index
    %c0_90 = arith.constant 0 : index
    %90 = vector.load %arg6[%c0_89, %c0_90] : memref<1x256xf32, #tpu.memory_space<vmem>>, vector<1x256xf32>
    %91 = vector.broadcast %90 : vector<1x256xf32> to vector<8x256xf32>
    %92 = arith.addf %89, %91 : vector<8x256xf32>
    %cst_91 = arith.constant 2.000000e-01 : f32
    %93 = vector.broadcast %cst_91 : f32 to vector<8x256xf32>
    %94 = arith.mulf %93, %92 : vector<8x256xf32>
    %95 = arith.maximumf %92, %94 : vector<8x256xf32>
    %96 = vector.extract_strided_slice %95 {offsets = [0, 0], sizes = [2, 256], strides = [1, 1]} : vector<8x256xf32> to vector<2x256xf32>
    %97 = arith.truncf %96 : vector<2x256xf32> to vector<2x256xbf16>
    %c2_92 = arith.constant 2 : index
    %c0_93 = arith.constant 0 : index
    %98 = vector.load %arg14[%c2_92, %c0_93] : memref<8x256xbf16, #tpu.memory_space<vmem>>, vector<2x256xbf16>
    tpu.vector_store %arg14[%c2_92, %c0_93], %97 {strides = array<i32>} : memref<8x256xbf16, #tpu.memory_space<vmem>>, vector<2x256xbf16>,
    %99 = vector.extract_strided_slice %95 {offsets = [2, 0], sizes = [2, 256], strides = [1, 1]} : vector<8x256xf32> to vector<2x256xf32>
    %100 = arith.truncf %99 : vector<2x256xf32> to vector<2x256xbf16>
    %c2_94 = arith.constant 2 : index
    %c0_95 = arith.constant 0 : index
    %101 = vector.load %arg15[%c2_94, %c0_95] : memref<8x256xbf16, #tpu.memory_space<vmem>>, vector<2x256xbf16>
    tpu.vector_store %arg15[%c2_94, %c0_95], %100 {strides = array<i32>} : memref<8x256xbf16, #tpu.memory_space<vmem>>, vector<2x256xbf16>,
    %102 = vector.extract_strided_slice %95 {offsets = [4, 0], sizes = [2, 256], strides = [1, 1]} : vector<8x256xf32> to vector<2x256xf32>
    %103 = arith.truncf %102 : vector<2x256xf32> to vector<2x256xbf16>
    %c4_96 = arith.constant 4 : index
    %c0_97 = arith.constant 0 : index
    %104 = vector.load %arg14[%c4_96, %c0_97] : memref<8x256xbf16, #tpu.memory_space<vmem>>, vector<2x256xbf16>
    tpu.vector_store %arg14[%c4_96, %c0_97], %103 {strides = array<i32>} : memref<8x256xbf16, #tpu.memory_space<vmem>>, vector<2x256xbf16>,
    %105 = vector.extract_strided_slice %95 {offsets = [6, 0], sizes = [2, 256], strides = [1, 1]} : vector<8x256xf32> to vector<2x256xf32>
    %106 = arith.truncf %105 : vector<2x256xf32> to vector<2x256xbf16>
    %c4_98 = arith.constant 4 : index
    %c0_99 = arith.constant 0 : index
    %107 = vector.load %arg15[%c4_98, %c0_99] : memref<8x256xbf16, #tpu.memory_space<vmem>>, vector<2x256xbf16>
    tpu.vector_store %arg15[%c4_98, %c0_99], %106 {strides = array<i32>} : memref<8x256xbf16, #tpu.memory_space<vmem>>, vector<2x256xbf16>,
    %c0_100 = arith.constant 0 : index
    %c0_101 = arith.constant 0 : index
    %108 = vector.load %arg14[%c0_100, %c0_101] : memref<8x256xbf16, #tpu.memory_space<vmem>>, vector<4x256xbf16>
    %c0_102 = arith.constant 0 : index
    %c0_103 = arith.constant 0 : index
    %c0_104 = arith.constant 0 : index
    %109 = vector.load %arg7[%c0_102, %c0_103, %c0_104] : memref<5x256x128xbf16, #tpu.memory_space<vmem>>, vector<1x256x128xbf16>
    %110 = vector.shape_cast %109 : vector<1x256x128xbf16> to vector<256x128xbf16>
    %cst_105 = arith.constant dense<0.000000e+00> : vector<4x128xf32>
    %111 = tpu.matmul %108, %110, %cst_105 {dimension_numbers = #tpu.dot_dimension_numbers<[1], [0], [0], [1], [0, 0, 1, 1], [], []>} : vector<4x256xbf16>, vector<256x128xbf16>, vector<4x128xf32> -> vector<4x128xf32>
    %c0_106 = arith.constant 0 : index
    %c0_107 = arith.constant 0 : index
    %112 = vector.load %arg15[%c0_106, %c0_107] : memref<8x256xbf16, #tpu.memory_space<vmem>>, vector<4x256xbf16>
    %c1_108 = arith.constant 1 : index
    %c0_109 = arith.constant 0 : index
    %c0_110 = arith.constant 0 : index
    %113 = vector.load %arg7[%c1_108, %c0_109, %c0_110] : memref<5x256x128xbf16, #tpu.memory_space<vmem>>, vector<1x256x128xbf16>
    %114 = vector.shape_cast %113 : vector<1x256x128xbf16> to vector<256x128xbf16>
    %cst_111 = arith.constant dense<0.000000e+00> : vector<4x128xf32>
    %115 = tpu.matmul %112, %114, %cst_111 {dimension_numbers = #tpu.dot_dimension_numbers<[1], [0], [0], [1], [0, 0, 1, 1], [], []>} : vector<4x256xbf16>, vector<256x128xbf16>, vector<4x128xf32> -> vector<4x128xf32>
    %116 = arith.addf %111, %115 : vector<4x128xf32>
    %c2_112 = arith.constant 2 : index
    %c0_113 = arith.constant 0 : index
    %117 = vector.load %arg14[%c2_112, %c0_113] : memref<8x256xbf16, #tpu.memory_space<vmem>>, vector<4x256xbf16>
    %c2_114 = arith.constant 2 : index
    %c0_115 = arith.constant 0 : index
    %c0_116 = arith.constant 0 : index
    %118 = vector.load %arg7[%c2_114, %c0_115, %c0_116] : memref<5x256x128xbf16, #tpu.memory_space<vmem>>, vector<1x256x128xbf16>
    %119 = vector.shape_cast %118 : vector<1x256x128xbf16> to vector<256x128xbf16>
    %cst_117 = arith.constant dense<0.000000e+00> : vector<4x128xf32>
    %120 = tpu.matmul %117, %119, %cst_117 {dimension_numbers = #tpu.dot_dimension_numbers<[1], [0], [0], [1], [0, 0, 1, 1], [], []>} : vector<4x256xbf16>, vector<256x128xbf16>, vector<4x128xf32> -> vector<4x128xf32>
    %121 = arith.addf %116, %120 : vector<4x128xf32>
    %c2_118 = arith.constant 2 : index
    %c0_119 = arith.constant 0 : index
    %122 = vector.load %arg15[%c2_118, %c0_119] : memref<8x256xbf16, #tpu.memory_space<vmem>>, vector<4x256xbf16>
    %c3_120 = arith.constant 3 : index
    %c0_121 = arith.constant 0 : index
    %c0_122 = arith.constant 0 : index
    %123 = vector.load %arg7[%c3_120, %c0_121, %c0_122] : memref<5x256x128xbf16, #tpu.memory_space<vmem>>, vector<1x256x128xbf16>
    %124 = vector.shape_cast %123 : vector<1x256x128xbf16> to vector<256x128xbf16>
    %cst_123 = arith.constant dense<0.000000e+00> : vector<4x128xf32>
    %125 = tpu.matmul %122, %124, %cst_123 {dimension_numbers = #tpu.dot_dimension_numbers<[1], [0], [0], [1], [0, 0, 1, 1], [], []>} : vector<4x256xbf16>, vector<256x128xbf16>, vector<4x128xf32> -> vector<4x128xf32>
    %126 = arith.addf %121, %125 : vector<4x128xf32>
    %c4_124 = arith.constant 4 : index
    %c0_125 = arith.constant 0 : index
    %127 = vector.load %arg14[%c4_124, %c0_125] : memref<8x256xbf16, #tpu.memory_space<vmem>>, vector<4x256xbf16>
    %c4_126 = arith.constant 4 : index
    %c0_127 = arith.constant 0 : index
    %c0_128 = arith.constant 0 : index
    %128 = vector.load %arg7[%c4_126, %c0_127, %c0_128] : memref<5x256x128xbf16, #tpu.memory_space<vmem>>, vector<1x256x128xbf16>
    %129 = vector.shape_cast %128 : vector<1x256x128xbf16> to vector<256x128xbf16>
    %cst_129 = arith.constant dense<0.000000e+00> : vector<4x128xf32>
    %130 = tpu.matmul %127, %129, %cst_129 {dimension_numbers = #tpu.dot_dimension_numbers<[1], [0], [0], [1], [0, 0, 1, 1], [], []>} : vector<4x256xbf16>, vector<256x128xbf16>, vector<4x128xf32> -> vector<4x128xf32>
    %131 = arith.addf %126, %130 : vector<4x128xf32>
    %c0_130 = arith.constant 0 : index
    %c0_131 = arith.constant 0 : index
    %132 = vector.load %arg8[%c0_130, %c0_131] : memref<1x128xf32, #tpu.memory_space<vmem>>, vector<1x128xf32>
    %133 = vector.broadcast %132 : vector<1x128xf32> to vector<4x128xf32>
    %134 = arith.addf %131, %133 : vector<4x128xf32>
    %cst_132 = arith.constant 2.000000e-01 : f32
    %135 = vector.broadcast %cst_132 : f32 to vector<4x128xf32>
    %136 = arith.mulf %135, %134 : vector<4x128xf32>
    %137 = arith.maximumf %134, %136 : vector<4x128xf32>
    %138 = vector.extract_strided_slice %137 {offsets = [0, 0], sizes = [2, 128], strides = [1, 1]} : vector<4x128xf32> to vector<2x128xf32>
    %139 = arith.truncf %138 : vector<2x128xf32> to vector<2x128xbf16>
    %c2_133 = arith.constant 2 : index
    %c0_134 = arith.constant 0 : index
    %140 = vector.load %arg16[%c2_133, %c0_134] : memref<6x128xbf16, #tpu.memory_space<vmem>>, vector<2x128xbf16>
    tpu.vector_store %arg16[%c2_133, %c0_134], %139 {strides = array<i32>} : memref<6x128xbf16, #tpu.memory_space<vmem>>, vector<2x128xbf16>,
    %141 = vector.extract_strided_slice %137 {offsets = [2, 0], sizes = [2, 128], strides = [1, 1]} : vector<4x128xf32> to vector<2x128xf32>
    %142 = arith.truncf %141 : vector<2x128xf32> to vector<2x128xbf16>
    %c2_135 = arith.constant 2 : index
    %c0_136 = arith.constant 0 : index
    %143 = vector.load %arg17[%c2_135, %c0_136] : memref<6x128xbf16, #tpu.memory_space<vmem>>, vector<2x128xbf16>
    tpu.vector_store %arg17[%c2_135, %c0_136], %142 {strides = array<i32>} : memref<6x128xbf16, #tpu.memory_space<vmem>>, vector<2x128xbf16>,
    %c0_137 = arith.constant 0 : index
    %c0_138 = arith.constant 0 : index
    %144 = vector.load %arg16[%c0_137, %c0_138] : memref<6x128xbf16, #tpu.memory_space<vmem>>, vector<2x128xbf16>
    %c0_139 = arith.constant 0 : index
    %c0_140 = arith.constant 0 : index
    %c0_141 = arith.constant 0 : index
    %145 = vector.load %arg9[%c0_139, %c0_140, %c0_141] : memref<5x128x64xbf16, #tpu.memory_space<vmem>>, vector<1x128x64xbf16>
    %146 = vector.shape_cast %145 : vector<1x128x64xbf16> to vector<128x64xbf16>
    %cst_142 = arith.constant dense<0.000000e+00> : vector<2x64xf32>
    %147 = tpu.matmul %144, %146, %cst_142 {dimension_numbers = #tpu.dot_dimension_numbers<[1], [0], [0], [1], [0, 0, 1, 1], [], []>} : vector<2x128xbf16>, vector<128x64xbf16>, vector<2x64xf32> -> vector<2x64xf32>
    %c0_143 = arith.constant 0 : index
    %c0_144 = arith.constant 0 : index
    %148 = vector.load %arg17[%c0_143, %c0_144] : memref<6x128xbf16, #tpu.memory_space<vmem>>, vector<2x128xbf16>
    %c1_145 = arith.constant 1 : index
    %c0_146 = arith.constant 0 : index
    %c0_147 = arith.constant 0 : index
    %149 = vector.load %arg9[%c1_145, %c0_146, %c0_147] : memref<5x128x64xbf16, #tpu.memory_space<vmem>>, vector<1x128x64xbf16>
    %150 = vector.shape_cast %149 : vector<1x128x64xbf16> to vector<128x64xbf16>
    %cst_148 = arith.constant dense<0.000000e+00> : vector<2x64xf32>
    %151 = tpu.matmul %148, %150, %cst_148 {dimension_numbers = #tpu.dot_dimension_numbers<[1], [0], [0], [1], [0, 0, 1, 1], [], []>} : vector<2x128xbf16>, vector<128x64xbf16>, vector<2x64xf32> -> vector<2x64xf32>
    %152 = arith.addf %147, %151 : vector<2x64xf32>
    %c2_149 = arith.constant 2 : index
    %c0_150 = arith.constant 0 : index
    %153 = vector.load %arg16[%c2_149, %c0_150] : memref<6x128xbf16, #tpu.memory_space<vmem>>, vector<2x128xbf16>
    %c2_151 = arith.constant 2 : index
    %c0_152 = arith.constant 0 : index
    %c0_153 = arith.constant 0 : index
    %154 = vector.load %arg9[%c2_151, %c0_152, %c0_153] : memref<5x128x64xbf16, #tpu.memory_space<vmem>>, vector<1x128x64xbf16>
    %155 = vector.shape_cast %154 : vector<1x128x64xbf16> to vector<128x64xbf16>
    %cst_154 = arith.constant dense<0.000000e+00> : vector<2x64xf32>
    %156 = tpu.matmul %153, %155, %cst_154 {dimension_numbers = #tpu.dot_dimension_numbers<[1], [0], [0], [1], [0, 0, 1, 1], [], []>} : vector<2x128xbf16>, vector<128x64xbf16>, vector<2x64xf32> -> vector<2x64xf32>
    %157 = arith.addf %152, %156 : vector<2x64xf32>
    %c2_155 = arith.constant 2 : index
    %c0_156 = arith.constant 0 : index
    %158 = vector.load %arg17[%c2_155, %c0_156] : memref<6x128xbf16, #tpu.memory_space<vmem>>, vector<2x128xbf16>
    %c3_157 = arith.constant 3 : index
    %c0_158 = arith.constant 0 : index
    %c0_159 = arith.constant 0 : index
    %159 = vector.load %arg9[%c3_157, %c0_158, %c0_159] : memref<5x128x64xbf16, #tpu.memory_space<vmem>>, vector<1x128x64xbf16>
    %160 = vector.shape_cast %159 : vector<1x128x64xbf16> to vector<128x64xbf16>
    %cst_160 = arith.constant dense<0.000000e+00> : vector<2x64xf32>
    %161 = tpu.matmul %158, %160, %cst_160 {dimension_numbers = #tpu.dot_dimension_numbers<[1], [0], [0], [1], [0, 0, 1, 1], [], []>} : vector<2x128xbf16>, vector<128x64xbf16>, vector<2x64xf32> -> vector<2x64xf32>
    %162 = arith.addf %157, %161 : vector<2x64xf32>
    %c4_161 = arith.constant 4 : index
    %c0_162 = arith.constant 0 : index
    %163 = vector.load %arg16[%c4_161, %c0_162] : memref<6x128xbf16, #tpu.memory_space<vmem>>, vector<2x128xbf16>
    %c4_163 = arith.constant 4 : index
    %c0_164 = arith.constant 0 : index
    %c0_165 = arith.constant 0 : index
    %164 = vector.load %arg9[%c4_163, %c0_164, %c0_165] : memref<5x128x64xbf16, #tpu.memory_space<vmem>>, vector<1x128x64xbf16>
    %165 = vector.shape_cast %164 : vector<1x128x64xbf16> to vector<128x64xbf16>
    %cst_166 = arith.constant dense<0.000000e+00> : vector<2x64xf32>
    %166 = tpu.matmul %163, %165, %cst_166 {dimension_numbers = #tpu.dot_dimension_numbers<[1], [0], [0], [1], [0, 0, 1, 1], [], []>} : vector<2x128xbf16>, vector<128x64xbf16>, vector<2x64xf32> -> vector<2x64xf32>
    %167 = arith.addf %162, %166 : vector<2x64xf32>
    %c0_167 = arith.constant 0 : index
    %c0_168 = arith.constant 0 : index
    %168 = vector.load %arg10[%c0_167, %c0_168] : memref<1x64xf32, #tpu.memory_space<vmem>>, vector<1x64xf32>
    %169 = vector.broadcast %168 : vector<1x64xf32> to vector<2x64xf32>
    %170 = arith.addf %167, %169 : vector<2x64xf32>
    %cst_169 = arith.constant 2.000000e-01 : f32
    %171 = vector.broadcast %cst_169 : f32 to vector<2x64xf32>
    %172 = arith.mulf %171, %170 : vector<2x64xf32>
    %173 = arith.maximumf %170, %172 : vector<2x64xf32>
    %c0_170 = arith.constant 0 : index
    %c0_171 = arith.constant 0 : index
    %174 = vector.load %arg11[%c0_170, %c0_171] : memref<2x64xf32, #tpu.memory_space<vmem>>, vector<2x64xf32>
    tpu.vector_store %arg11[%c0_170, %c0_171], %173 {strides = array<i32>} : memref<2x64xf32, #tpu.memory_space<vmem>>, vector<2x64xf32>,
    return
  }
  func.func @transform_0(%arg0: i32) -> (i32, i32) {
    %c0_i32 = arith.constant 0 : i32
    %c0_i32_0 = arith.constant 0 : i32
    %c0_i32_1 = arith.constant 0 : i32
    return %c0_i32, %c0_i32_0 : i32, i32
  }
  func.func @transform_1(%arg0: i32) -> (i32, i32) {
    %c0_i32 = arith.constant 0 : i32
    %c0_i32_0 = arith.constant 0 : i32
    %c0_i32_1 = arith.constant 0 : i32
    return %c0_i32, %c0_i32_0 : i32, i32
  }
  func.func @transform_2(%arg0: i32) -> (i32, i32, i32) {
    %c0_i32 = arith.constant 0 : i32
    %c0_i32_0 = arith.constant 0 : i32
    %c0_i32_1 = arith.constant 0 : i32
    %c0_i32_2 = arith.constant 0 : i32
    return %c0_i32, %c0_i32_0, %c0_i32_1 : i32, i32, i32
  }
  func.func @transform_3(%arg0: i32) -> (i32, i32) {
    %c0_i32 = arith.constant 0 : i32
    %c0_i32_0 = arith.constant 0 : i32
    %c0_i32_1 = arith.constant 0 : i32
    return %c0_i32, %c0_i32_0 : i32, i32
  }
  func.func @transform_4(%arg0: i32) -> (i32, i32, i32) {
    %c0_i32 = arith.constant 0 : i32
    %c0_i32_0 = arith.constant 0 : i32
    %c0_i32_1 = arith.constant 0 : i32
    %c0_i32_2 = arith.constant 0 : i32
    return %c0_i32, %c0_i32_0, %c0_i32_1 : i32, i32, i32
  }
  func.func @transform_5(%arg0: i32) -> (i32, i32) {
    %c0_i32 = arith.constant 0 : i32
    %c0_i32_0 = arith.constant 0 : i32
    %c0_i32_1 = arith.constant 0 : i32
    return %c0_i32, %c0_i32_0 : i32, i32
  }
  func.func @transform_6(%arg0: i32) -> (i32, i32, i32) {
    %c0_i32 = arith.constant 0 : i32
    %c0_i32_0 = arith.constant 0 : i32
    %c0_i32_1 = arith.constant 0 : i32
    %c0_i32_2 = arith.constant 0 : i32
    return %c0_i32, %c0_i32_0, %c0_i32_1 : i32, i32, i32
  }
  func.func @transform_7(%arg0: i32) -> (i32, i32) {
    %c0_i32 = arith.constant 0 : i32
    %c0_i32_0 = arith.constant 0 : i32
    %c0_i32_1 = arith.constant 0 : i32
    return %c0_i32, %c0_i32_0 : i32, i32
  }
  func.func @transform_8(%arg0: i32) -> (i32, i32, i32) {
    %c0_i32 = arith.constant 0 : i32
    %c0_i32_0 = arith.constant 0 : i32
    %c0_i32_1 = arith.constant 0 : i32
    %c0_i32_2 = arith.constant 0 : i32
    return %c0_i32, %c0_i32_0, %c0_i32_1 : i32, i32, i32
  }
  func.func @transform_9(%arg0: i32) -> (i32, i32) {
    %c0_i32 = arith.constant 0 : i32
    %c0_i32_0 = arith.constant 0 : i32
    %c0_i32_1 = arith.constant 0 : i32
    return %c0_i32, %c0_i32_0 : i32, i32
  }
  func.func @transform_10(%arg0: i32) -> (i32, i32) {
    %c0_i32 = arith.constant 0 : i32
    %c0_i32_0 = arith.constant 0 : i32
    %c0_i32_1 = arith.constant 0 : i32
    return %c0_i32, %c0_i32_0 : i32, i32
  }
}

</mosaic_0001>

<bundles_post_ra>
// kernel: forward.1
= control target key start
LH: loop header
LB: loop body
LE: loop exit
PB: predicated region body
PF: predicated region fallthrough
CT: control target
= control target key end

     0   :  { %15 = vsyncpa [#allocation9], 0  ;;  %s5796_s0 = inlined_call_operand.vmem [shape: bf16[20,128], index: 0, kind: input, shape index: {}]   ;;  %s5797_s1 = inlined_call_operand.vmem [shape: bf16[20,128], index: 1, kind: input, shape index: {}]   ;;  %s5798_s2 = inlined_call_operand.vmem [shape: bf16[5,128,256], index: 2, kind: input, shape index: {}]   ;;  %s5799_s3 = inlined_call_operand.hbm [shape: f32[1,256], index: 3, kind: input, shape index: {}]   ;;  %s5800_s4 = inlined_call_operand.hbm [shape: bf16[5,256,256], index: 4, kind: input, shape index: {}]   ;;  %s5801_s5 = inlined_call_operand.hbm [shape: f32[1,256], index: 5, kind: input, shape index: {}]   ;;  %s5802_s6 = inlined_call_operand.hbm [shape: bf16[5,256,128], index: 6, kind: input, shape index: {}]   ;;  %s5803_s7 = inlined_call_operand.vmem [shape: f32[1,128], index: 7, kind: input, shape index: {}]   ;;  %s5804_s8 = inlined_call_operand.vmem [shape: bf16[5,128,64], index: 8, kind: input, shape index: {}]   ;;  %s5805_s9 = inlined_call_operand.hbm [shape: f32[1,64], index: 9, kind: input, shape index: {}]   ;;  %s5806_s10 = inlined_call_operand.hbm [shape: f32[2,64], index: 10, kind: output, shape index: {}]  }
   0x1   :  { %16 = vsyncpa [#allocation12], 0 }
   0x2   :  { %17 = vsyncpa [#allocation15], 0 }
   0x3   :  { %18 = vsyncpa [#allocation10], 0  ;;  %s5164_s13 = smov [#allocation11]   ;;  %s5024_s7 = scalar_lea.hbm %s5800_s4, 20480 }
   0x4   :  { %s40_s14 = sshll.u32 %s5164_s13, 4  ;;  %p5025_p0 = scmp.ne.s32.totalorder %s5800_s4, %s5024_s7  ;;  %s41_s14 = int_to_ptr.vmem [resolvable:$true] %s40_s14 }
   0x5   :  { %p5028_p1 = scmp.lt.u32.totalorder %s5024_s7, %s5800_s4 }
   0x7   :  { %p5030_p2 = pnand %p5028_p1, %p5025_p0 }
   0x9   :  { %5033 = shalt.err (!%p5030_p2)
}
   0xa   :  { %s5034_s21 = scalar_lea.vmem %s41_s14, 20480  ;;  %p5039_p4 = scmp.lt.s32.totalorder %s41_s14, %s41_s14 }
   0xb   :  { %p5035_p3 = scmp.ne.s32.totalorder %s41_s14, %s5034_s21  ;;  %p5040_p5 = scmp.lt.s32.totalorder %s5034_s21, %s5034_s21 }
   0xd   :  { %p5041_p6 = por %p5040_p5, %p5039_p4 }
   0xf   :  { %p5042_p7 = pnand %p5041_p6, %p5035_p3 }
  0x11   :  { %5045 = shalt.err (!%p5042_p7)
}
  0x12   :  { %s5165_s22 = smov 128   ;;  %s5166_s23 = smov 8  }
  0x13   :  { %46 = dma.hbm_to_vmem [thread:$0]  %s5800_s4, 20480, %s41_s14, [#allocation12], %s5165_s22, %s5165_s22, %s5166_s23  }
  0x14   :  { %s5167_s26 = smov [#allocation14]   ;;  %s5046_s30 = scalar_lea.hbm %s5802_s6, 10240 }
  0x15   :  { %s62_s27 = sshll.u32 %s5167_s26, 4  ;;  %p5047_p8 = scmp.ne.s32.totalorder %s5802_s6, %s5046_s30  ;;  %s63_s27 = int_to_ptr.vmem [resolvable:$true] %s62_s27 }
  0x16   :  { %p5050_p9 = scmp.lt.u32.totalorder %s5046_s30, %s5802_s6 }
  0x18   :  { %p5052_p10 = pnand %p5050_p9, %p5047_p8 }
  0x1a   :  { %5055 = shalt.err (!%p5052_p10)
}
  0x1b   :  { %s5056_s16 = scalar_lea.vmem %s63_s27, 10240  ;;  %p5061_p12 = scmp.lt.s32.totalorder %s63_s27, %s63_s27 }
  0x1c   :  { %p5057_p11 = scmp.ne.s32.totalorder %s63_s27, %s5056_s16  ;;  %p5062_p13 = scmp.lt.s32.totalorder %s5056_s16, %s5056_s16 }
  0x1e   :  { %p5063_p0 = por %p5062_p13, %p5061_p12 }
  0x20   :  { %p5064_p1 = pnand %p5063_p0, %p5057_p11 }
  0x22   :  { %5067 = shalt.err (!%p5064_p1)
}
  0x23   :  { %s5168_s4 = smov 64   ;;  %s5169_s14 = smov 4  }
  0x24   :  { %68 = dma.hbm_to_vmem [thread:$0]  %s5802_s6, 10240, %s63_s27, [#allocation15], %s5168_s4, %s5168_s4, %s5169_s14  }
  0x25   :  { %s5170_s18 = smov [#allocation8]   ;;  %s5171_s20 = smov [#allocation13]  }
  0x26   :  { %s31_s19 = sshll.u32 %s5170_s18, 4  ;;  %s53_s21 = sshll.u32 %s5171_s20, 4  ;;  %s32_s19 = int_to_ptr.vmem [resolvable:$true] %s31_s19  ;;  %s54_s21 = int_to_ptr.vmem [resolvable:$true] %s53_s21 }
  0x27   :  { %s5068_s24 = scalar_lea.hbm %s5799_s3, 32 }
  0x28   :  { %p5069_p2 = scmp.ne.s32.totalorder %s5799_s3, %s5068_s24  ;;  %p5072_p3 = scmp.lt.u32.totalorder %s5068_s24, %s5799_s3 }
  0x2a   :  { %p5074_p4 = pnand %p5072_p3, %p5069_p2 }
  0x2c   :  { %5077 = shalt.err (!%p5074_p4)
}
  0x2d   :  { %s5078_s6 = scalar_lea.vmem %s32_s19, 32  ;;  %p5083_p6 = scmp.lt.s32.totalorder %s32_s19, %s32_s19 }
  0x2e   :  { %p5079_p5 = scmp.ne.s32.totalorder %s32_s19, %s5078_s6  ;;  %p5084_p7 = scmp.lt.s32.totalorder %s5078_s6, %s5078_s6 }
  0x30   :  { %p5085_p8 = por %p5084_p7, %p5083_p6 }
  0x32   :  { %p5086_p9 = pnand %p5085_p8, %p5079_p5 }
  0x34   :  { %5089 = shalt.err (!%p5086_p9)
}
  0x35   :  { %34 = dma.hbm_to_vmem [thread:$0]  %s5799_s3, 32, %s32_s19, [#allocation9]  }
  0x36   :  { %s5090_s13 = scalar_lea.hbm %s5801_s5, 32 }
  0x37   :  { %p5091_p10 = scmp.ne.s32.totalorder %s5801_s5, %s5090_s13  ;;  %p5094_p11 = scmp.lt.u32.totalorder %s5090_s13, %s5801_s5 }
  0x39   :  { %p5096_p12 = pnand %p5094_p11, %p5091_p10 }
  0x3b   :  { %5099 = shalt.err (!%p5096_p12)
}
  0x3c   :  { %s5100_s7 = scalar_lea.vmem %s54_s21, 32  ;;  %p5105_p0 = scmp.lt.s32.totalorder %s54_s21, %s54_s21 }
  0x3d   :  { %p5101_p13 = scmp.ne.s32.totalorder %s54_s21, %s5100_s7  ;;  %p5106_p1 = scmp.lt.s32.totalorder %s5100_s7, %s5100_s7 }
  0x3f   :  { %p5107_p2 = por %p5106_p1, %p5105_p0 }
  0x41   :  { %p5108_p3 = pnand %p5107_p2, %p5101_p13 }
  0x43   :  { %5111 = shalt.err (!%p5108_p3)
}
  0x44   :  { %56 = dma.hbm_to_vmem [thread:$0]  %s5801_s5, 32, %s54_s21, [#allocation12]  }
  0x45   :  { %s5172_s18 = smov [#allocation16]   ;;  %s5112_s23 = scalar_lea.hbm %s5805_s9, 16 }
  0x46   :  { %s79_s19 = sshll.u32 %s5172_s18, 4  ;;  %p5113_p4 = scmp.ne.s32.totalorder %s5805_s9, %s5112_s23  ;;  %s80_s19 = int_to_ptr.vmem [resolvable:$true] %s79_s19 }
  0x47   :  { %p5116_p5 = scmp.lt.u32.totalorder %s5112_s23, %s5805_s9 }
  0x49   :  { %p5118_p6 = pnand %p5116_p5, %p5113_p4 }
  0x4b   :  { %5121 = shalt.err (!%p5118_p6)
}
  0x4c   :  { %s5122_s29 = scalar_lea.vmem %s80_s19, 16  ;;  %s5126_s5 = scalar_lea.vmem %s80_s19, 32 }
  0x4d   :  { %p5123_p7 = scmp.ne.s32.totalorder %s80_s19, %s5122_s29  ;;  %p5127_p8 = scmp.lt.s32.totalorder %s80_s19, %s80_s19 }
  0x4e   :  { %p5128_p9 = scmp.lt.s32.totalorder %s5126_s5, %s5122_s29 }
  0x50   :  { %p5129_p10 = por %p5128_p9, %p5127_p8 }
  0x52   :  { %p5130_p11 = pnand %p5129_p10, %p5123_p7 }
  0x54   :  { %5133 = shalt.err (!%p5130_p11)
}
  0x55   :  { %82 = dma.hbm_to_vmem [thread:$0]  %s5805_s9, 16, %s80_s19, [#allocation15]  }
  0x56   :  { %5156 = dma.done.wait [#allocation9], 32  }
  0x57   :  { %5157 = vsyncadd [#allocation9], 4294967264 }
  0x58   :  { %5158 = dma.done.wait [#allocation12], 20512  }
  0x59   :  { %5159 = vsyncadd [#allocation12], 4294946784 }
  0x5a   :  { %5160 = dma.done.wait [#allocation15], 10256  }
  0x5b   :  { %5161 = vsyncadd [#allocation15], 4294957040  ;;  %v5173_v0 = vmov 0   ;;  %v4510_v1 = vld [vmem:[%s5798_s2 + $0x84] ss:$8 sps:$4 sm:$0xff]   ;;  %vm430_vm0 = vcmask 1046528  }
  0x5c   :  { %262 = vmatprep.mubr.bf16.mxu0 %v5173_v0  ;;  %99 = vst [vmem:[#allocation2] sm:$0xff] %v5173_v0  ;;  %100 = vst [vmem:[#allocation2 + $0x8] sm:$0x33] %v5173_v0  ;;  %v4512_v2 = vld [vmem:[%s5798_s2 + $0x80] ss:$8 sps:$4 sm:$0xff]   ;;  %230 = vmatprep.subr.bf16.mxu0 %v4510_v1  ;;  %vm746_vm1 = vcmask 1045504  }
  0x5d   :  { %101 = vst [vmem:[#allocation3] sm:$0xff] %v5173_v0  ;;  %102 = vst [vmem:[#allocation3 + $0x8] sm:$0x33] %v5173_v0  ;;  %v4513_v3 = vld [vmem:[%s5798_s2 + $0x94] ss:$8 sps:$4 sm:$0xff]   ;;  %231 = vmatpush1.bf16.msra.mxu0 %v4512_v2  ;;  %v4537_v18 = vld [vmem:[%s5797_s1] sm:$0xff]  }
  0x5e   :  { %103 = vst [vmem:[#allocation4] sm:$0xff] %v5173_v0  ;;  %104 = vst [vmem:[#allocation5] sm:$0xff] %v5173_v0  ;;  %v4515_v4 = vld [vmem:[%s5798_s2 + $0x90] ss:$8 sps:$4 sm:$0xff]   ;;  %232 = vmatprep.subr.bf16.mxu0 %v4513_v3  ;;  %v4516_v5 = vld [vmem:[%s5798_s2 + $0xa4] ss:$8 sps:$4 sm:$0xff]  }
  0x5f   :  { %105 = vst [vmem:[#allocation6] sm:$0x7] %v5173_v0  ;;  %106 = vst [vmem:[#allocation7] sm:$0x7] %v5173_v0  ;;  %v4518_v6 = vld [vmem:[%s5798_s2 + $0xa0] ss:$8 sps:$4 sm:$0xff]  }
  0x60   :  { %v4519_v7 = vld [vmem:[%s5798_s2 + $0xb4] ss:$8 sps:$4 sm:$0xff]   ;;  %v4521_v8 = vld [vmem:[%s5798_s2 + $0xb0] ss:$8 sps:$4 sm:$0xff]   ;;  %v4522_v9 = vld [vmem:[%s5798_s2 + $0xc4] ss:$8 sps:$4 sm:$0xff]  }
  0x61   :  { %233 = vmatpush1.bf16.msra.mxu0 %v4515_v4  ;;  %v4524_v10 = vld [vmem:[%s5798_s2 + $0xc0] ss:$8 sps:$4 sm:$0xff]   ;;  %v4525_v11 = vld [vmem:[%s5798_s2 + $0xd4] ss:$8 sps:$4 sm:$0xff]   ;;  %v4527_v12 = vld [vmem:[%s5798_s2 + $0xd0] ss:$8 sps:$4 sm:$0xff]  }
  0x62   :  { %234 = vmatprep.subr.bf16.mxu0 %v4516_v5  ;;  %v4528_v13 = vld [vmem:[%s5798_s2 + $0xe4] ss:$8 sps:$4 sm:$0xff]   ;;  %v4530_v14 = vld [vmem:[%s5798_s2 + $0xe0] ss:$8 sps:$4 sm:$0xff]   ;;  %v4531_v15 = vld [vmem:[%s5798_s2 + $0xf4] ss:$8 sps:$4 sm:$0xff]  }
  0x63   :  { %v4533_v16 = vld [vmem:[%s5798_s2 + $0xf0] ss:$8 sps:$4 sm:$0xff]   ;;  %v4536_v17 = vld [vmem:[%s5798_s2 + $0x4] ss:$8 sps:$4 sm:$0xff]   ;;  %v4534_v19 = vld [vmem:[%s5798_s2] ss:$8 sps:$4 sm:$0xff]  }
  0x64   :  { %v4540_v20 = vld [vmem:[%s5798_s2 + $0x14] ss:$8 sps:$4 sm:$0xff]   ;;  %v4538_v21 = vld [vmem:[%s5798_s2 + $0x10] ss:$8 sps:$4 sm:$0xff]   ;;  %v4543_v22 = vld [vmem:[%s5798_s2 + $0x24] ss:$8 sps:$4 sm:$0xff]  }
  0x65   :  { %235 = vmatpush1.bf16.msra.mxu0 %v4518_v6  ;;  %v4541_v23 = vld [vmem:[%s5798_s2 + $0x20] ss:$8 sps:$4 sm:$0xff]   ;;  %v4546_v24 = vld [vmem:[%s5798_s2 + $0x34] ss:$8 sps:$4 sm:$0xff]   ;;  %v4544_v25 = vld [vmem:[%s5798_s2 + $0x30] ss:$8 sps:$4 sm:$0xff]  }
  0x66   :  { %236 = vmatprep.subr.bf16.mxu0 %v4519_v7  ;;  %v4549_v26 = vld [vmem:[%s5798_s2 + $0x44] ss:$8 sps:$4 sm:$0xff]   ;;  %v4547_v27 = vld [vmem:[%s5798_s2 + $0x40] ss:$8 sps:$4 sm:$0xff]   ;;  %v4552_v28 = vld [vmem:[%s5798_s2 + $0x54] ss:$8 sps:$4 sm:$0xff]  }
  0x67   :  { %v4550_v29 = vld [vmem:[%s5798_s2 + $0x50] ss:$8 sps:$4 sm:$0xff]   ;;  %v4555_v30 = vld [vmem:[%s5798_s2 + $0x64] ss:$8 sps:$4 sm:$0xff]   ;;  %v4553_v31 = vld [vmem:[%s5798_s2 + $0x60] ss:$8 sps:$4 sm:$0xff]  }
  0x68   :  { %v4558_v32 = vld [vmem:[%s5798_s2 + $0x74] ss:$8 sps:$4 sm:$0xff]   ;;  %v4556_v33 = vld [vmem:[%s5798_s2 + $0x70] ss:$8 sps:$4 sm:$0xff]   ;;  %v4561_v34 = vld [vmem:[%s5798_s2 + $0x104] ss:$8 sps:$4 sm:$0xff]  }
  0x69   :  { %237 = vmatpush1.bf16.msra.mxu0 %v4521_v8  ;;  %v4638_v35 = vld [vmem:[#allocation11 + $0x104] ss:$8 sps:$4 sm:$0xff]   ;;  %v4640_v36 = vld [vmem:[#allocation11 + $0x100] ss:$8 sps:$4 sm:$0xff]   ;;  %v4644_v38 = vld [vmem:[#allocation11 + $0x114] ss:$8 sps:$4 sm:$0xff]  }
  0x6a   :  { %238 = vmatprep.subr.bf16.mxu0 %v4522_v9  ;;  %v4562_v37 = vld [vmem:[%s5796_s0] sm:$0xff]   ;;  %1173 = vmatprep.subr.bf16.mxu1 %v4638_v35  ;;  %v4565_v40 = vld [vmem:[%s5798_s2 + $0x114] ss:$8 sps:$4 sm:$0xff]   ;;  %v4563_v43 = vld [vmem:[%s5798_s2 + $0x110] ss:$8 sps:$4 sm:$0xff]   ;;  %vm5175_vm2 = vmmov 0  }
  0x6b   :  { %v4559_v39 = vld [vmem:[%s5798_s2 + $0x100] ss:$8 sps:$4 sm:$0xff]   ;;  %1174 = vmatpush1.bf16.msra.mxu1 %v4640_v36  ;;  %v4568_v44 = vld [vmem:[%s5798_s2 + $0x124] ss:$8 sps:$4 sm:$0xff]   ;;  %v4571_v48 = vld [vmem:[%s5798_s2 + $0x134] ss:$8 sps:$4 sm:$0xff]  }
  0x6c   :  { %1175 = vmatprep.subr.bf16.mxu1 %v4644_v38  ;;  %v4646_v41 = vld [vmem:[#allocation11 + $0x110] ss:$8 sps:$4 sm:$0xff]   ;;  %v4650_v42 = vld [vmem:[#allocation11 + $0x124] ss:$8 sps:$4 sm:$0xff]   ;;  %v4652_v45 = vld [vmem:[#allocation11 + $0x120] ss:$8 sps:$4 sm:$0xff]  }
  0x6d   :  { %239 = vmatpush1.bf16.msra.mxu0 %v4524_v10  ;;  %v4656_v46 = vld [vmem:[#allocation11 + $0x134] ss:$8 sps:$4 sm:$0xff]   ;;  %v4566_v47 = vld [vmem:[%s5798_s2 + $0x120] ss:$8 sps:$4 sm:$0xff]   ;;  %v5450_v62 = vld [vmem:[%s5796_s0 + $0x4] sm:$0xf] }
  0x6e   :  { %240 = vmatprep.subr.bf16.mxu0 %v4525_v11  ;;  %v4658_v49 = vld [vmem:[#allocation11 + $0x130] ss:$8 sps:$4 sm:$0xff]   ;;  %v4662_v50 = vld [vmem:[#allocation11 + $0x144] ss:$8 sps:$4 sm:$0xff]   ;;  %v4664_v53 = vld [vmem:[#allocation11 + $0x140] ss:$8 sps:$4 sm:$0xff]  }
  0x6f   :  { %1176 = vmatpush1.bf16.msra.mxu1 %v4646_v41  ;;  %v4569_v51 = vld [vmem:[%s5798_s2 + $0x130] ss:$8 sps:$4 sm:$0xff]   ;;  %v4574_v52 = vld [vmem:[%s5798_s2 + $0x144] ss:$8 sps:$4 sm:$0xff]   ;;  %v4572_v55 = vld [vmem:[%s5798_s2 + $0x140] ss:$8 sps:$4 sm:$0xff]  }
  0x70   :  { %1177 = vmatprep.subr.bf16.mxu1 %v4650_v42  ;;  %v4668_v54 = vld [vmem:[#allocation11 + $0x154] ss:$8 sps:$4 sm:$0xff]   ;;  %v4670_v57 = vld [vmem:[#allocation11 + $0x150] ss:$8 sps:$4 sm:$0xff]   ;;  %v4674_v59 = vld [vmem:[#allocation11 + $0x164] ss:$8 sps:$4 sm:$0xff]  }
  0x71   :  { %241 = vmatpush1.bf16.msra.mxu0 %v4527_v12  ;;  %v4577_v56 = vld [vmem:[%s5798_s2 + $0x154] ss:$8 sps:$4 sm:$0xff]   ;;  %v4575_v58 = vld [vmem:[%s5798_s2 + $0x150] ss:$8 sps:$4 sm:$0xff]   ;;  %v4580_v60 = vld [vmem:[%s5798_s2 + $0x164] ss:$8 sps:$4 sm:$0xff]  }
  0x72   :  { %242 = vmatprep.subr.bf16.mxu0 %v4528_v13  ;;  %v402_v61 = vld [vmem:[%s5796_s0] sm:$0xe]  ;;  %v4588_v2 = vld [vmem:[%s5796_s0 + $0x8] ss:$0 sps:$4 sm:$0x11]   ;;  %vm3675_vm3 = vcmask 517120  }
  0x73   :  { %1178 = vmatpush1.bf16.msra.mxu1 %v4652_v45  ;;  %v4676_v63 = vld [vmem:[#allocation11 + $0x160] ss:$8 sps:$4 sm:$0xff]   ;;  %v4680_v3 = vld [vmem:[#allocation11 + $0x174] ss:$8 sps:$4 sm:$0xff]   ;;  %v4682_v5 = vld [vmem:[#allocation11 + $0x170] ss:$8 sps:$4 sm:$0xff]   ;;  %v3760_v6 = vcombine.low %v402_v61, %v5450_v62 }
  0x74   :  { %1179 = vmatprep.subr.bf16.mxu1 %v4656_v46  ;;  %v4578_v1 = vld [vmem:[%s5798_s2 + $0x160] ss:$8 sps:$4 sm:$0xff]   ;;  %v4583_v4 = vld [vmem:[%s5798_s2 + $0x174] ss:$8 sps:$4 sm:$0xff]   ;;  %v4581_v8 = vld [vmem:[%s5798_s2 + $0x170] ss:$8 sps:$4 sm:$0xff]  }
  0x75   :  { %243 = vmatpush1.bf16.msra.mxu0 %v4530_v14  ;;  %v4686_v7 = vld [vmem:[#allocation11 + $0x184] ss:$8 sps:$4 sm:$0xff]   ;;  %v4688_v10 = vld [vmem:[#allocation11 + $0x180] ss:$8 sps:$4 sm:$0xff]   ;;  %v431_v11 = vrot.slane %v3760_v6, 1  ;;  %v432_v12 = vrot.slane %v4588_v2, 1 }
  0x76   :  { %244 = vmatprep.subr.bf16.mxu0 %v4531_v15  ;;  %v4586_v9 = vld [vmem:[%s5798_s2 + $0x184] ss:$8 sps:$4 sm:$0xff]   ;;  %v4584_v14 = vld [vmem:[%s5798_s2 + $0x180] ss:$8 sps:$4 sm:$0xff]   ;;  %v4591_v15 = vld [vmem:[%s5798_s2 + $0x194] ss:$8 sps:$4 sm:$0xff]  }
  0x77   :  { %1180 = vmatpush1.bf16.msra.mxu1 %v4658_v49  ;;  %v4692_v13 = vld [vmem:[#allocation11 + $0x194] ss:$8 sps:$4 sm:$0xff]   ;;  %v4618_v46 = vld [vmem:[%s5798_s2 + $0x220] ss:$8 sps:$4 sm:$0xff]  }
  0x78   :  { %1181 = vmatprep.subr.bf16.mxu1 %v4662_v50  ;;  %v4612_v36 = vld [vmem:[%s5798_s2 + $0x204] ss:$8 sps:$4 sm:$0xff]   ;;  %v4617_v42 = vld [vmem:[%s5798_s2 + $0x214] ss:$8 sps:$4 sm:$0xff]  }
  0x79   :  { %245 = vmatpush1.bf16.msra.mxu0 %v4533_v16  ;;  %v4694_v16 = vld [vmem:[#allocation11 + $0x190] ss:$8 sps:$4 sm:$0xff]   ;;  %v4655_v61 = vld [vmem:[#allocation11 + $0x324] ss:$8 sps:$4 sm:$0xff]  }
  0x7a   :  { %359 = vmatprep.subr.bf16.mxu0 %v4536_v17  ;;  %v433_v17 = vsel %vm430_vm0, %v431_v11, %v432_v12  ;;  %v4620_v45 = vld [vmem:[%s5798_s2 + $0x224] ss:$8 sps:$4 sm:$0xff]   ;;  %v4629_v50 = vld [vmem:[%s5798_s2 + $0x254] ss:$8 sps:$4 sm:$0xff]  }
  0x7b   :  { %1182 = vmatpush1.bf16.msra.mxu1 %v4664_v53  ;;  %v4626_v49 = vld [vmem:[%s5798_s2 + $0x244] ss:$8 sps:$4 sm:$0xff]   ;;  %v4630_v53 = vld [vmem:[%s5798_s2 + $0x260] ss:$8 sps:$4 sm:$0xff]  }
  0x7c   :  { %263 = vmatmul.mubr.bf16.vlgmr.msra.gmra.mrb[0].mxu0 %v4537_v18  ;;  %1183 = vmatprep.subr.bf16.mxu1 %v4668_v54  ;;  %v4589_v18 = vld [vmem:[%s5798_s2 + $0x190] ss:$8 sps:$4 sm:$0xff]   ;;  %v4635_v54 = vld [vmem:[%s5798_s2 + $0x274] ss:$8 sps:$4 sm:$0xff]  }
  0x7d   :  { %360 = vmatpush1.bf16.msra.mxu0 %v4534_v19  ;;  %391 = vmatprep.mubr.bf16.mxu0 %v5173_v0  ;;  %v4594_v19 = vld [vmem:[%s5798_s2 + $0x1a4] ss:$8 sps:$4 sm:$0xff]  }
  0x7e   :  { %361 = vmatprep.subr.bf16.mxu0 %v4540_v20  ;;  %v4592_v20 = vld [vmem:[%s5798_s2 + $0x1a0] ss:$8 sps:$4 sm:$0xff]   ;;  %v4697_v12 = vld [vmem:[#allocation11 + $0x394] ss:$8 sps:$4 sm:$0xff]  }
  0x7f   :  { %1184 = vmatpush1.bf16.msra.mxu1 %v4670_v57  ;;  %v4641_v57 = vld [vmem:[#allocation11 + $0x300] ss:$8 sps:$4 sm:$0xff]   ;;  %v4667_v2 = vld [vmem:[#allocation11 + $0x344] ss:$8 sps:$4 sm:$0xff]  }
  0x80   :  { %1185 = vmatprep.subr.bf16.mxu1 %v4674_v59  ;;  %v4679_v6 = vld [vmem:[#allocation11 + $0x364] ss:$8 sps:$4 sm:$0xff]   ;;  %v4689_v11 = vld [vmem:[#allocation11 + $0x380] ss:$8 sps:$4 sm:$0xff]  }
  0x81   :  { %362 = vmatpush1.bf16.msra.mxu0 %v4538_v21  ;;  %v4597_v21 = vld [vmem:[%s5798_s2 + $0x1b4] ss:$8 sps:$4 sm:$0xff]  }
  0x82   :  { %363 = vmatprep.subr.bf16.mxu0 %v4543_v22  ;;  %v4595_v22 = vld [vmem:[%s5798_s2 + $0x1b0] ss:$8 sps:$4 sm:$0xff]  }
  0x83   :  { %1186 = vmatpush1.bf16.msra.mxu1 %v4676_v63  ;;  %v4661_v63 = vld [vmem:[#allocation11 + $0x334] ss:$8 sps:$4 sm:$0xff]  }
  0x84   :  { %1187 = vmatprep.subr.bf16.mxu1 %v4680_v3  ;;  %v4665_v3 = vld [vmem:[#allocation11 + $0x340] ss:$8 sps:$4 sm:$0xff]  }
  0x85   :  { %364 = vmatpush1.bf16.msra.mxu0 %v4541_v23  ;;  %v4600_v23 = vld [vmem:[%s5798_s2 + $0x1c4] ss:$8 sps:$4 sm:$0xff]  }
  0x86   :  { %365 = vmatprep.subr.bf16.mxu0 %v4546_v24  ;;  %v4598_v24 = vld [vmem:[%s5798_s2 + $0x1c0] ss:$8 sps:$4 sm:$0xff]  }
  0x87   :  { %1188 = vmatpush1.bf16.msra.mxu1 %v4682_v5  ;;  %v4671_v5 = vld [vmem:[#allocation11 + $0x350] ss:$8 sps:$4 sm:$0xff]  }
  0x88   :  { %1189 = vmatprep.subr.bf16.mxu1 %v4686_v7  ;;  %v4677_v7 = vld [vmem:[#allocation11 + $0x360] ss:$8 sps:$4 sm:$0xff]  }
  0x89   :  { %366 = vmatpush1.bf16.msra.mxu0 %v4544_v25  ;;  %v4603_v25 = vld [vmem:[%s5798_s2 + $0x1d4] ss:$8 sps:$4 sm:$0xff]  }
  0x8a   :  { %367 = vmatprep.subr.bf16.mxu0 %v4549_v26  ;;  %v4601_v26 = vld [vmem:[%s5798_s2 + $0x1d0] ss:$8 sps:$4 sm:$0xff]  }
  0x8b   :  { %1190 = vmatpush1.bf16.msra.mxu1 %v4688_v10  ;;  %v4691_v10 = vld [vmem:[#allocation11 + $0x384] ss:$8 sps:$4 sm:$0xff]  }
  0x8c   :  { %1191 = vmatprep.subr.bf16.mxu1 %v4692_v13  ;;  %v4695_v13 = vld [vmem:[#allocation11 + $0x390] ss:$8 sps:$4 sm:$0xff]  }
  0x8d   :  { %368 = vmatpush1.bf16.msra.mxu0 %v4547_v27  ;;  %v4606_v27 = vld [vmem:[%s5798_s2 + $0x1e4] ss:$8 sps:$4 sm:$0xff]  }
  0x8e   :  { %369 = vmatprep.subr.bf16.mxu0 %v4552_v28  ;;  %v721_v28 = vld [vmem:[%s5796_s0] sm:$0xc] }
  0x8f   :  { %1192 = vmatpush1.bf16.msra.mxu1 %v4694_v16  ;;  %v3828_v35 = vcombine.low %v721_v28, %v5450_v62  ;;  %v4653_v62 = vld [vmem:[#allocation11 + $0x320] ss:$8 sps:$4 sm:$0xff]   ;;  %v4703_v16 = vld [vmem:[#allocation11 + $0x3a4] ss:$8 sps:$4 sm:$0xff]   ;;  %v4721_v28 = vld [vmem:[#allocation11 + $0x3d4] ss:$8 sps:$4 sm:$0xff]  }
  0x91   :  { %370 = vmatpush1.bf16.msra.mxu0 %v4550_v29  ;;  %v4604_v29 = vld [vmem:[%s5798_s2 + $0x1e0] ss:$8 sps:$4 sm:$0xff]  }
  0x92   :  { %371 = vmatprep.subr.bf16.mxu0 %v4555_v30  ;;  %v4613_v30 = vld [vmem:[%s5797_s1] sm:$0xfe]  }
  0x95   :  { %372 = vmatpush1.bf16.msra.mxu0 %v4553_v31  ;;  %v4614_v31 = vld [vmem:[%s5797_s1 + $0x8] ss:$0 sps:$4 sm:$0x11]  }
  0x96   :  { %373 = vmatprep.subr.bf16.mxu0 %v4558_v32  ;;  %v4609_v32 = vld [vmem:[%s5798_s2 + $0x1f4] ss:$8 sps:$4 sm:$0xff]   ;;  %v591_v38 = vrot.slane %v4614_v31, 1 }
  0x97   :  { %v4724_v31 = vld [vmem:[#allocation11 + $0x1e0] ss:$8 sps:$4 sm:$0xff]  }
  0x99   :  { %374 = vmatpush1.bf16.msra.mxu0 %v4556_v33  ;;  %v4637_v33 = vld [vmem:[%s5796_s0 + $0x8] ss:$0 sps:$4 sm:$0x33]  }
  0x9a   :  { %515 = vmatprep.subr.bf16.mxu0 %v4561_v34  ;;  %v4607_v34 = vld [vmem:[%s5798_s2 + $0x1f0] ss:$8 sps:$4 sm:$0xff]   ;;  %v748_v41 = vrot.slane %v4637_v33, 2  ;;  %v4727_v33 = vld [vmem:[#allocation11 + $0x3e4] ss:$8 sps:$4 sm:$0xff]  }
  0x9c   :  { %392 = vmatmul.mubr.bf16.vlgmr.msra.gmra.mrb[0].mxu0 %v4562_v37  ;;  %v590_v37 = vrot.slane %v4613_v30, 1  ;;  %v4722_v30 = vld [vmem:[#allocation11 + $0x1e4] ss:$8 sps:$4 sm:$0xff]  }
  0x9d   :  { %516 = vmatpush1.bf16.msra.mxu0 %v4559_v39  ;;  %547 = vmatprep.mubr.bf16.mxu0 %v5173_v0  ;;  %v4610_v39 = vld [vmem:[%s5798_s2 + $0x200] ss:$8 sps:$4 sm:$0xff]  }
  0x9e   :  { %517 = vmatprep.subr.bf16.mxu0 %v4565_v40  ;;  %v747_v40 = vrot.slane %v3828_v35, 2  ;;  %v4730_v35 = vld [vmem:[#allocation11 + $0x1f0] ss:$8 sps:$4 sm:$0xff]  }
  0xa0   :  { %v749_v59 = vsel %vm746_vm1, %v747_v40, %v748_v41 }
  0xa1   :  { %518 = vmatpush1.bf16.msra.mxu0 %v4563_v43  ;;  %v592_v43 = vsel %vm430_vm0, %v590_v37, %v591_v38  ;;  %v4731_v37 = vld [vmem:[#allocation11 + $0x3f0] ss:$8 sps:$4 sm:$0xff]   ;;  %v4738_v38 = vld [vmem:[#allocation11 + $0x4] ss:$8 sps:$4 sm:$0xff]  }
  0xa2   :  { %519 = vmatprep.subr.bf16.mxu0 %v4568_v44  ;;  %v4615_v44 = vld [vmem:[%s5798_s2 + $0x210] ss:$8 sps:$4 sm:$0xff]  }
  0xa5   :  { %520 = vmatpush1.bf16.msra.mxu0 %v4566_v47  ;;  %v4623_v47 = vld [vmem:[%s5798_s2 + $0x234] ss:$8 sps:$4 sm:$0xff]  }
  0xa6   :  { %521 = vmatprep.subr.bf16.mxu0 %v4571_v48  ;;  %v4621_v48 = vld [vmem:[%s5798_s2 + $0x230] ss:$8 sps:$4 sm:$0xff]  }
  0xa9   :  { %522 = vmatpush1.bf16.msra.mxu0 %v4569_v51  ;;  %v4627_v51 = vld [vmem:[%s5798_s2 + $0x250] ss:$8 sps:$4 sm:$0xff]  }
  0xaa   :  { %523 = vmatprep.subr.bf16.mxu0 %v4574_v52  ;;  %v4632_v52 = vld [vmem:[%s5798_s2 + $0x264] ss:$8 sps:$4 sm:$0xff]  }
  0xad   :  { %524 = vmatpush1.bf16.msra.mxu0 %v4572_v55  ;;  %v4633_v55 = vld [vmem:[%s5798_s2 + $0x270] ss:$8 sps:$4 sm:$0xff]  }
  0xae   :  { %525 = vmatprep.subr.bf16.mxu0 %v4577_v56  ;;  %v4643_v56 = vld [vmem:[#allocation11 + $0x304] ss:$8 sps:$4 sm:$0xff]  }
  0xb1   :  { %526 = vmatpush1.bf16.msra.mxu0 %v4575_v58  ;;  %v4649_v58 = vld [vmem:[#allocation11 + $0x314] ss:$8 sps:$4 sm:$0xff]  }
  0xb2   :  { %527 = vmatprep.subr.bf16.mxu0 %v4580_v60  ;;  %v4647_v60 = vld [vmem:[#allocation11 + $0x310] ss:$8 sps:$4 sm:$0xff]  }
  0xb5   :  { %528 = vmatpush1.bf16.msra.mxu0 %v4578_v1  ;;  %v4659_v1 = vld [vmem:[#allocation11 + $0x330] ss:$8 sps:$4 sm:$0xff]  }
  0xb6   :  { %529 = vmatprep.subr.bf16.mxu0 %v4583_v4  ;;  %v4673_v4 = vld [vmem:[#allocation11 + $0x354] ss:$8 sps:$4 sm:$0xff]  }
  0xb9   :  { %530 = vmatpush1.bf16.msra.mxu0 %v4581_v8  ;;  %v4685_v8 = vld [vmem:[#allocation11 + $0x374] ss:$8 sps:$4 sm:$0xff]  }
  0xba   :  { %674 = vmatprep.subr.bf16.mxu0 %v4586_v9  ;;  %v4683_v9 = vld [vmem:[#allocation11 + $0x370] ss:$8 sps:$4 sm:$0xff]  }
  0xbc   :  { %548 = vmatmul.mubr.bf16.vlgmr.msra.gmra.mrb[0].mxu0 %v433_v17  ;;  %v4701_v17 = vld [vmem:[#allocation11 + $0x3a0] ss:$8 sps:$4 sm:$0xff]  }
  0xbd   :  { %675 = vmatpush1.bf16.msra.mxu0 %v4584_v14  ;;  %706 = vmatprep.mubr.bf16.mxu0 %v5173_v0  ;;  %v4698_v14 = vld [vmem:[#allocation11 + $0x1a4] ss:$8 sps:$4 sm:$0xff]  }
  0xbe   :  { %676 = vmatprep.subr.bf16.mxu0 %v4591_v15  ;;  %v4700_v15 = vld [vmem:[#allocation11 + $0x1a0] ss:$8 sps:$4 sm:$0xff]   ;;  %1193 = vmatprep.subr.bf16.mxu1 %v4698_v14 }
  0xbf   :  { %1194 = vmatpush1.bf16.msra.mxu1 %v4700_v15 }
  0xc1   :  { %677 = vmatpush1.bf16.msra.mxu0 %v4589_v18  ;;  %v4704_v18 = vld [vmem:[#allocation11 + $0x1b4] ss:$8 sps:$4 sm:$0xff]  }
  0xc2   :  { %678 = vmatprep.subr.bf16.mxu0 %v4594_v19  ;;  %v4706_v19 = vld [vmem:[#allocation11 + $0x1b0] ss:$8 sps:$4 sm:$0xff]   ;;  %1195 = vmatprep.subr.bf16.mxu1 %v4704_v18  ;;  %v4749_v18 = vld [vmem:[#allocation11 + $0x24] ss:$8 sps:$4 sm:$0xff]  }
  0xc3   :  { %1196 = vmatpush1.bf16.msra.mxu1 %v4706_v19  ;;  %v4747_v19 = vld [vmem:[#allocation11 + $0x20] ss:$8 sps:$4 sm:$0xff]  }
  0xc5   :  { %679 = vmatpush1.bf16.msra.mxu0 %v4592_v20  ;;  %v4709_v20 = vld [vmem:[#allocation11 + $0x3b4] ss:$8 sps:$4 sm:$0xff]  }
  0xc6   :  { %680 = vmatprep.subr.bf16.mxu0 %v4597_v21  ;;  %v4707_v21 = vld [vmem:[#allocation11 + $0x3b0] ss:$8 sps:$4 sm:$0xff]  }
  0xc9   :  { %681 = vmatpush1.bf16.msra.mxu0 %v4595_v22  ;;  %v4710_v22 = vld [vmem:[#allocation11 + $0x1c4] ss:$8 sps:$4 sm:$0xff]  }
  0xca   :  { %682 = vmatprep.subr.bf16.mxu0 %v4600_v23  ;;  %v4712_v23 = vld [vmem:[#allocation11 + $0x1c0] ss:$8 sps:$4 sm:$0xff]   ;;  %1197 = vmatprep.subr.bf16.mxu1 %v4710_v22  ;;  %v4755_v22 = vld [vmem:[#allocation11 + $0x44] ss:$8 sps:$4 sm:$0xff]  }
  0xcb   :  { %1198 = vmatpush1.bf16.msra.mxu1 %v4712_v23  ;;  %v4753_v23 = vld [vmem:[#allocation11 + $0x40] ss:$8 sps:$4 sm:$0xff]  }
  0xcd   :  { %683 = vmatpush1.bf16.msra.mxu0 %v4598_v24  ;;  %v4715_v24 = vld [vmem:[#allocation11 + $0x3c4] ss:$8 sps:$4 sm:$0xff]  }
  0xce   :  { %684 = vmatprep.subr.bf16.mxu0 %v4603_v25  ;;  %v4713_v25 = vld [vmem:[#allocation11 + $0x3c0] ss:$8 sps:$4 sm:$0xff]  }
  0xd1   :  { %685 = vmatpush1.bf16.msra.mxu0 %v4601_v26  ;;  %v4716_v26 = vld [vmem:[#allocation11 + $0x1d4] ss:$8 sps:$4 sm:$0xff]  }
  0xd2   :  { %686 = vmatprep.subr.bf16.mxu0 %v4606_v27  ;;  %v4718_v27 = vld [vmem:[#allocation11 + $0x1d0] ss:$8 sps:$4 sm:$0xff]   ;;  %1199 = vmatprep.subr.bf16.mxu1 %v4716_v26  ;;  %v4761_v26 = vld [vmem:[#allocation11 + $0x64] ss:$8 sps:$4 sm:$0xff]  }
  0xd3   :  { %1200 = vmatpush1.bf16.msra.mxu1 %v4718_v27  ;;  %v4759_v27 = vld [vmem:[#allocation11 + $0x60] ss:$8 sps:$4 sm:$0xff]  }
  0xd4   :  { %1201 = vmatprep.subr.bf16.mxu1 %v4722_v30  ;;  %v4767_v30 = vld [vmem:[#allocation11 + $0x84] ss:$8 sps:$4 sm:$0xff]  }
  0xd5   :  { %687 = vmatpush1.bf16.msra.mxu0 %v4604_v29  ;;  %v4719_v29 = vld [vmem:[#allocation11 + $0x3d0] ss:$8 sps:$4 sm:$0xff]  }
  0xd6   :  { %688 = vmatprep.subr.bf16.mxu0 %v4609_v32  ;;  %v4725_v32 = vld [vmem:[#allocation11 + $0x3e0] ss:$8 sps:$4 sm:$0xff]  }
  0xd7   :  { %1202 = vmatpush1.bf16.msra.mxu1 %v4724_v31  ;;  %v4765_v31 = vld [vmem:[#allocation11 + $0x80] ss:$8 sps:$4 sm:$0xff]  }
  0xd9   :  { %689 = vmatpush1.bf16.msra.mxu0 %v4607_v34  ;;  %v4728_v34 = vld [vmem:[#allocation11 + $0x1f4] ss:$8 sps:$4 sm:$0xff]  }
  0xda   :  { %831 = vmatprep.subr.bf16.mxu0 %v4612_v36  ;;  %v4733_v36 = vld [vmem:[#allocation11 + $0x3f4] ss:$8 sps:$4 sm:$0xff]   ;;  %1203 = vmatprep.subr.bf16.mxu1 %v4728_v34  ;;  %v4773_v34 = vld [vmem:[#allocation11 + $0xa4] ss:$8 sps:$4 sm:$0xff]  }
  0xdb   :  { %1204 = vmatpush1.bf16.msra.mxu1 %v4730_v35  ;;  %v4771_v35 = vld [vmem:[#allocation11 + $0xa0] ss:$8 sps:$4 sm:$0xff]  }
  0xdc   :  { %707 = vmatmul.mubr.bf16.vlgmr.msra.gmra.mrb[0].mxu0 %v592_v43  ;;  %1381 = vmatprep.subr.bf16.mxu1 %v4738_v38  ;;  %v4779_v38 = vld [vmem:[#allocation11 + $0xc4] ss:$8 sps:$4 sm:$0xff]  }
  0xdd   :  { %832 = vmatpush1.bf16.msra.mxu0 %v4610_v39  ;;  %863 = vmatprep.mubr.bf16.mxu0 %v5173_v0  ;;  %v4624_v0 = vld [vmem:[%s5798_s2 + $0x240] ss:$8 sps:$4 sm:$0xff]   ;;  %v880_v39 = vlaneseq }
  0xde   :  { %833 = vmatprep.subr.bf16.mxu0 %v4617_v42  ;;  %v878_v42 = vld [vmem:[#allocation8] sm:$0x3] }
  0xdf   :  { %v5578_v40 = vshrl.u32 %v880_v39, 7  ;;  %v4777_v39 = vld [vmem:[#allocation11 + $0xc0] ss:$8 sps:$4 sm:$0xff]  }
  0xe1   :  { %834 = vmatpush1.bf16.msra.mxu0 %v4615_v44  ;;  %v882_v41 = vsub.s32 0, %v5578_v40  ;;  %v886_v43 = vsub.s32 1, %v5578_v40 }
  0xe2   :  { %835 = vmatprep.subr.bf16.mxu0 %v4620_v45 }
  0xe3   :  { %v883_v44 = vrot.slane %v878_v42, %v882_v41  ;;  %v887_v45 = vrot.slane %v878_v42, %v886_v43  ;;  %v4782_v42 = vld [vmem:[#allocation11 + $0xd4] ss:$8 sps:$4 sm:$0xff]  }
  0xe5   :  { %836 = vmatpush1.bf16.msra.mxu0 %v4618_v46 }
  0xe6   :  { %837 = vmatprep.subr.bf16.mxu0 %v4623_v47 }
  0xe9   :  { %838 = vmatpush1.bf16.msra.mxu0 %v4621_v48 }
  0xea   :  { %839 = vmatprep.subr.bf16.mxu0 %v4626_v49 }
  0xed   :  { %840 = vmatpush1.bf16.msra.mxu0 %v4624_v0 }
  0xee   :  { %841 = vmatprep.subr.bf16.mxu0 %v4629_v50 }
  0xf1   :  { %842 = vmatpush1.bf16.msra.mxu0 %v4627_v51 }
  0xf2   :  { %843 = vmatprep.subr.bf16.mxu0 %v4632_v52 }
  0xf5   :  { %844 = vmatpush1.bf16.msra.mxu0 %v4630_v53 }
  0xf6   :  { %845 = vmatprep.subr.bf16.mxu0 %v4635_v54 }
  0xf9   :  { %846 = vmatpush1.bf16.msra.mxu0 %v4633_v55 }
  0xfa   :  { %1879 = vmatprep.subr.bf16.mxu0 %v4643_v56 }
  0xfc   :  { %864 = vmatmul.mubr.bf16.vlgmr.msra.gmra.mrb[0].mxu0 %v749_v59 }
  0xfd   :  { %1880 = vmatpush1.bf16.msra.mxu0 %v4641_v57 }
  0xfe   :  { %1881 = vmatprep.subr.bf16.mxu0 %v4649_v58 }
 0x101   :  { %1882 = vmatpush1.bf16.msra.mxu0 %v4647_v60 }
 0x102   :  { %1883 = vmatprep.subr.bf16.mxu0 %v4655_v61 }
 0x105   :  { %1884 = vmatpush1.bf16.msra.mxu0 %v4653_v62 }
 0x106   :  { %1885 = vmatprep.subr.bf16.mxu0 %v4661_v63 }
 0x109   :  { %1886 = vmatpush1.bf16.msra.mxu0 %v4659_v1 }
 0x10a   :  { %1887 = vmatprep.subr.bf16.mxu0 %v4667_v2 }
 0x10d   :  { %1888 = vmatpush1.bf16.msra.mxu0 %v4665_v3 }
 0x10e   :  { %1889 = vmatprep.subr.bf16.mxu0 %v4673_v4 }
 0x111   :  { %1890 = vmatpush1.bf16.msra.mxu0 %v4671_v5 }
 0x112   :  { %1891 = vmatprep.subr.bf16.mxu0 %v4679_v6  ;;  %v4736_v6 = vld [vmem:[#allocation11] ss:$8 sps:$4 sm:$0xff]  }
 0x115   :  { %1892 = vmatpush1.bf16.msra.mxu0 %v4677_v7 }
 0x116   :  { %1893 = vmatprep.subr.bf16.mxu0 %v4685_v8 }
 0x119   :  { %1894 = vmatpush1.bf16.msra.mxu0 %v4683_v9  ;;  %v4746_v9 = vld [vmem:[#allocation11 + $0x14] ss:$8 sps:$4 sm:$0xff]  }
 0x11a   :  { %1895 = vmatprep.subr.bf16.mxu0 %v4691_v10 }
 0x11d   :  { %1896 = vmatpush1.bf16.msra.mxu0 %v4689_v11 }
 0x11e   :  { %1897 = vmatprep.subr.bf16.mxu0 %v4697_v12 }
 0x121   :  { %1898 = vmatpush1.bf16.msra.mxu0 %v4695_v13 }
 0x122   :  { %1899 = vmatprep.subr.bf16.mxu0 %v4703_v16 }
 0x125   :  { %1900 = vmatpush1.bf16.msra.mxu0 %v4701_v17  ;;  %v4744_v17 = vld [vmem:[#allocation11 + $0x10] ss:$8 sps:$4 sm:$0xff]  }
 0x126   :  { %1901 = vmatprep.subr.bf16.mxu0 %v4709_v20  ;;  %v4752_v20 = vld [vmem:[#allocation11 + $0x34] ss:$8 sps:$4 sm:$0xff]  }
 0x129   :  { %1902 = vmatpush1.bf16.msra.mxu0 %v4707_v21  ;;  %v4750_v21 = vld [vmem:[#allocation11 + $0x30] ss:$8 sps:$4 sm:$0xff]  }
 0x12a   :  { %1903 = vmatprep.subr.bf16.mxu0 %v4715_v24  ;;  %v4758_v24 = vld [vmem:[#allocation11 + $0x54] ss:$8 sps:$4 sm:$0xff]  }
 0x12d   :  { %1904 = vmatpush1.bf16.msra.mxu0 %v4713_v25  ;;  %v4756_v25 = vld [vmem:[#allocation11 + $0x50] ss:$8 sps:$4 sm:$0xff]  }
 0x12e   :  { %1905 = vmatprep.subr.bf16.mxu0 %v4721_v28  ;;  %v4764_v28 = vld [vmem:[#allocation11 + $0x74] ss:$8 sps:$4 sm:$0xff]  }
 0x131   :  { %1906 = vmatpush1.bf16.msra.mxu0 %v4719_v29  ;;  %v4762_v29 = vld [vmem:[#allocation11 + $0x70] ss:$8 sps:$4 sm:$0xff]  }
 0x132   :  { %1907 = vmatprep.subr.bf16.mxu0 %v4727_v33  ;;  %v4768_v33 = vld [vmem:[#allocation11 + $0x90] ss:$8 sps:$4 sm:$0xff]  }
 0x135   :  { %1908 = vmatpush1.bf16.msra.mxu0 %v4725_v32  ;;  %v4770_v32 = vld [vmem:[#allocation11 + $0x94] ss:$8 sps:$4 sm:$0xff]  }
 0x136   :  { %1909 = vmatprep.subr.bf16.mxu0 %v4733_v36  ;;  %v4776_v36 = vld [vmem:[#allocation11 + $0xb4] ss:$8 sps:$4 sm:$0xff]  }
 0x139   :  { %1910 = vmatpush1.bf16.msra.mxu0 %v4731_v37  ;;  %v4774_v37 = vld [vmem:[#allocation11 + $0xb0] ss:$8 sps:$4 sm:$0xff]  }
 0x1cf   :  { %v865_v46 = vpop.f32.mrb[0].mxu0 }
 0x1d0   :  { %v890_v47 = vadd.f32 %v883_v44, %v865_v46  ;;  %v867_v48 = vpop.f32.mrb[1].mxu0  ;;  %v4783_v46 = vld [vmem:[#allocation11 + $0xe0] ss:$8 sps:$4 sm:$0xff]  }
 0x1d1   :  { %v891_v49 = vadd.f32 %v887_v45, %v867_v48  ;;  %v869_v0 = vpop.f32.mrb[2].mxu0  ;;  %v4786_v48 = vld [vmem:[#allocation11 + $0xf0] ss:$8 sps:$4 sm:$0xff]  }
 0x1d2   :  { %v894_v50 = vmul.f32 0.2, %v890_v47  ;;  %v892_v51 = vadd.f32 %v883_v44, %v869_v0  ;;  %v871_v52 = vpop.f32.mrb[3].mxu0  ;;  %v4780_v44 = vld [vmem:[#allocation11 + $0xd0] ss:$8 sps:$4 sm:$0xff]  }
 0x1d3   :  { %v895_v53 = vmul.f32 0.2, %v891_v49  ;;  %v893_v54 = vadd.f32 %v887_v45, %v871_v52  ;;  %v4785_v45 = vld [vmem:[#allocation11 + $0xe4] ss:$8 sps:$4 sm:$0xff]   ;;  %v4797_v52 = vld [vmem:[#allocation11 + $0x214] ss:$8 sps:$4 sm:$0xff]  }
 0x1d4   :  { %v898_v55 = vmax.f32 %v890_v47, %v894_v50  ;;  %v896_v56 = vmul.f32 0.2, %v892_v51  ;;  %v4788_v47 = vld [vmem:[#allocation11 + $0xf4] ss:$8 sps:$4 sm:$0xff]   ;;  %v4789_v50 = vld [vmem:[#allocation11 + $0x200] ss:$8 sps:$4 sm:$0xff]  }
 0x1d5   :  { %v899_v57 = vmax.f32 %v891_v49, %v895_v53  ;;  %v897_v58 = vmul.f32 0.2, %v893_v54  ;;  %v4791_v49 = vld [vmem:[#allocation11 + $0x204] ss:$8 sps:$4 sm:$0xff]  }
 0x1d6   :  { %v900_v59 = vmax.f32 %v892_v51, %v896_v56  ;;  %v4798_v56 = vld [vmem:[#allocation11 + $0x220] ss:$8 sps:$4 sm:$0xff]  }
 0x1d7   :  { %v4222_v60 = vpack.c.bf16 %v899_v57, %v898_v55  ;;  %v901_v61 = vmax.f32 %v893_v54, %v897_v58  ;;  %v4795_v54 = vld [vmem:[#allocation11 + $0x210] ss:$8 sps:$4 sm:$0xff]   ;;  %v4800_v55 = vld [vmem:[#allocation11 + $0x224] ss:$8 sps:$4 sm:$0xff]   ;;  %v4803_v57 = vld [vmem:[#allocation11 + $0x234] ss:$8 sps:$4 sm:$0xff]  }
 0x1d8   :  { %v4801_v58 = vld [vmem:[#allocation11 + $0x230] ss:$8 sps:$4 sm:$0xff]  }
 0x1d9   :  { %v909_v62 = vrot.slane %v4222_v60, 7  ;;  %913 = vst [vmem:[#allocation3] sm:$0x22] %v4222_v60  ;;  %914 = vst [vmem:[#allocation2] sm:$0x44] %v4222_v60  ;;  %v3847_v63 = vrot.slane %v4222_v60, 9  ;;  %v4223_v1 = vpack.c.bf16 %v901_v61, %v900_v59 }
 0x1da   :  { %v4806_v59 = vld [vmem:[#allocation11 + $0x244] ss:$8 sps:$4 sm:$0xff]   ;;  %v4804_v60 = vld [vmem:[#allocation11 + $0x240] ss:$8 sps:$4 sm:$0xff]   ;;  %v4809_v61 = vld [vmem:[#allocation11 + $0x254] ss:$8 sps:$4 sm:$0xff]  }
 0x1db   :  { %911 = vst [vmem:[#allocation2] sm:$0x22] %v909_v62  ;;  %918 = vst [vmem:[#allocation3] sm:$0x44] %v3847_v63  ;;  %v926_v2 = vrot.slane %v4223_v1, 5  ;;  %v929_v3 = vrot.slane %v4223_v1, 6 }
 0x1dc   :  { %v3849_v4 = vrot.slane %v4223_v1, 11  ;;  %v4807_v62 = vld [vmem:[#allocation11 + $0x250] ss:$8 sps:$4 sm:$0xff]   ;;  %v4812_v63 = vld [vmem:[#allocation11 + $0x264] ss:$8 sps:$4 sm:$0xff]  }
 0x1dd   :  { %928 = vst [vmem:[#allocation2] sm:$0x88] %v926_v2  ;;  %931 = vst [vmem:[#allocation3] sm:$0x88] %v929_v3  ;;  %v932_v5 = vrot.slane %v929_v3, 4 }
 0x1de   :  { %938 = vst [vmem:[#allocation3 + $0x8] sm:$0x11] %v3849_v4  ;;  %v4810_v1 = vld [vmem:[#allocation11 + $0x260] ss:$8 sps:$4 sm:$0xff]   ;;  %v4815_v2 = vld [vmem:[#allocation11 + $0x274] ss:$8 sps:$4 sm:$0xff]  }
 0x1df   :  { %934 = vst [vmem:[#allocation2 + $0x8] sm:$0x11] %v932_v5  ;;  %v4813_v3 = vld [vmem:[#allocation11 + $0x270] ss:$8 sps:$4 sm:$0xff]   ;;  %v4818_v4 = vld [vmem:[#allocation11 + $0x284] ss:$8 sps:$4 sm:$0xff]  }
 0x1e0   :  { %v4816_v5 = vld [vmem:[#allocation11 + $0x280] ss:$8 sps:$4 sm:$0xff]  }
 0x1e4   :  { %v972_v7 = vld [vmem:[#allocation3] sm:$0xff]  ;;  %v5586_v8 = vld [vmem:[#allocation2] sm:$0xff] }
 0x1e5   :  { %v3850_v10 = vcombine.low %v972_v7, %v972_v7  ;;  %v3851_v11 = vcombine.high %v972_v7, %v972_v7  ;;  %v4741_v12 = vld [vmem:[#allocation3] ss:$8 sps:$4 sm:$0x1e]   ;;  %v4743_v13 = vld [vmem:[#allocation3 + $0x4] ss:$8 sps:$4 sm:$0x1e]   ;;  %v3885_v14 = vcombine.high %v5586_v8, %v5586_v8  ;;  %v3884_v51 = vcombine.low %v5586_v8, %v5586_v8 }
 0x1e6   :  { %v1715_v15 = vrot.slane %v4741_v12, 1  ;;  %v1716_v16 = vrot.slane %v4743_v13, 1  ;;  %v4794_v0 = vld [vmem:[#allocation2 + $0x4] ss:$8 sps:$4 sm:$0x1e]  }
 0x1e7   :  { %1205 = vmatprep.mubr.bf16.mxu1 %v3851_v11  ;;  %v1466_v53 = vrot.slane %v4794_v0, 1  ;;  %v4819_v7 = vld [vmem:[#allocation11 + $0x290] ss:$8 sps:$4 sm:$0xff]   ;;  %v4824_v8 = vld [vmem:[#allocation11 + $0x2a4] ss:$8 sps:$4 sm:$0xff]  }
 0x1e8   :  { %1206 = vmatmul.mubr.bf16.vlgmr.msra.gmra.mrb[0].mxu1 %v3850_v10  ;;  %1911 = vmatprep.mubr.bf16.mxu0 %v1716_v16  ;;  %v4827_v10 = vld [vmem:[#allocation11 + $0x2b4] ss:$8 sps:$4 sm:$0xff]   ;;  %v4825_v11 = vld [vmem:[#allocation11 + $0x2b0] ss:$8 sps:$4 sm:$0xff]   ;;  %v4830_v12 = vld [vmem:[#allocation11 + $0x2c4] ss:$8 sps:$4 sm:$0xff]  }
 0x1e9   :  { %1382 = vmatpush1.bf16.msra.mxu1 %v4736_v6  ;;  %1413 = vmatprep.mubr.bf16.mxu1 %v3885_v14  ;;  %v4821_v6 = vld [vmem:[#allocation11 + $0x294] ss:$8 sps:$4 sm:$0xff]   ;;  %v4828_v13 = vld [vmem:[#allocation11 + $0x2c0] ss:$8 sps:$4 sm:$0xff]   ;;  %v4836_v16 = vld [vmem:[#allocation11 + $0x2e4] ss:$8 sps:$4 sm:$0xff]  }
 0x1ea   :  { %1383 = vmatprep.subr.bf16.mxu1 %v4746_v9  ;;  %1912 = vmatmul.mubr.bf16.vlgmr.msra.gmra.mrb[4].mxu0 %v1715_v15  ;;  %v4822_v9 = vld [vmem:[#allocation11 + $0x2a0] ss:$8 sps:$4 sm:$0xff]   ;;  %v4833_v14 = vld [vmem:[#allocation11 + $0x2d4] ss:$8 sps:$4 sm:$0xff]   ;;  %v4831_v15 = vld [vmem:[#allocation11 + $0x2d0] ss:$8 sps:$4 sm:$0xff]  }
 0x1eb   :  { %v4876_v0 = vld [vmem:[#allocation11 + $0x4b0] ss:$8 sps:$4 sm:$0xff]  }
 0x1ed   :  { %1384 = vmatpush1.bf16.msra.mxu1 %v4744_v17  ;;  %v4834_v17 = vld [vmem:[#allocation11 + $0x2e0] ss:$8 sps:$4 sm:$0xff]  }
 0x1ee   :  { %1385 = vmatprep.subr.bf16.mxu1 %v4749_v18  ;;  %v4839_v18 = vld [vmem:[#allocation11 + $0x2f4] ss:$8 sps:$4 sm:$0xff]  }
 0x1f1   :  { %1386 = vmatpush1.bf16.msra.mxu1 %v4747_v19  ;;  %v4837_v19 = vld [vmem:[#allocation11 + $0x2f0] ss:$8 sps:$4 sm:$0xff]  }
 0x1f2   :  { %1387 = vmatprep.subr.bf16.mxu1 %v4752_v20  ;;  %v4792_v20 = vld [vmem:[#allocation2] ss:$8 sps:$4 sm:$0x1e]  }
 0x1f5   :  { %1388 = vmatpush1.bf16.msra.mxu1 %v4750_v21  ;;  %v4842_v21 = vld [vmem:[#allocation11 + $0x404] ss:$8 sps:$4 sm:$0xff]  }
 0x1f6   :  { %1389 = vmatprep.subr.bf16.mxu1 %v4755_v22  ;;  %v4845_v22 = vld [vmem:[#allocation2 + $0x4] ss:$8 sps:$4 sm:$0x3c]  }
 0x1f9   :  { %1390 = vmatpush1.bf16.msra.mxu1 %v4753_v23  ;;  %v4840_v23 = vld [vmem:[#allocation11 + $0x400] ss:$8 sps:$4 sm:$0xff]  }
 0x1fa   :  { %1391 = vmatprep.subr.bf16.mxu1 %v4758_v24  ;;  %v1465_v24 = vrot.slane %v4792_v20, 1 }
 0x1fd   :  { %1392 = vmatpush1.bf16.msra.mxu1 %v4756_v25  ;;  %v4848_v25 = vld [vmem:[#allocation11 + $0x414] ss:$8 sps:$4 sm:$0xff]  }
 0x1fe   :  { %1393 = vmatprep.subr.bf16.mxu1 %v4761_v26  ;;  %v1966_v26 = vrot.slane %v4845_v22, 2  ;;  %v4902_v22 = vld [vmem:[#allocation14 + $0x150] sm:$0xff]  }
 0x201   :  { %1394 = vmatpush1.bf16.msra.mxu1 %v4759_v27  ;;  %v4846_v27 = vld [vmem:[#allocation11 + $0x410] ss:$8 sps:$4 sm:$0xff]  }
 0x202   :  { %1395 = vmatprep.subr.bf16.mxu1 %v4764_v28  ;;  %v4851_v28 = vld [vmem:[#allocation11 + $0x424] ss:$8 sps:$4 sm:$0xff]  }
 0x205   :  { %1396 = vmatpush1.bf16.msra.mxu1 %v4762_v29  ;;  %v4849_v29 = vld [vmem:[#allocation11 + $0x420] ss:$8 sps:$4 sm:$0xff]  }
 0x206   :  { %1397 = vmatprep.subr.bf16.mxu1 %v4767_v30  ;;  %v4854_v30 = vld [vmem:[#allocation11 + $0x434] ss:$8 sps:$4 sm:$0xff]  }
 0x209   :  { %1398 = vmatpush1.bf16.msra.mxu1 %v4765_v31  ;;  %v4852_v31 = vld [vmem:[#allocation11 + $0x430] ss:$8 sps:$4 sm:$0xff]  }
 0x20a   :  { %1399 = vmatprep.subr.bf16.mxu1 %v4770_v32  ;;  %v4857_v32 = vld [vmem:[#allocation11 + $0x444] ss:$8 sps:$4 sm:$0xff]  }
 0x20d   :  { %1400 = vmatpush1.bf16.msra.mxu1 %v4768_v33  ;;  %v4855_v33 = vld [vmem:[#allocation11 + $0x440] ss:$8 sps:$4 sm:$0xff]  }
 0x20e   :  { %1401 = vmatprep.subr.bf16.mxu1 %v4773_v34  ;;  %v4860_v34 = vld [vmem:[#allocation11 + $0x454] ss:$8 sps:$4 sm:$0xff]  }
 0x211   :  { %1402 = vmatpush1.bf16.msra.mxu1 %v4771_v35  ;;  %v4858_v35 = vld [vmem:[#allocation11 + $0x450] ss:$8 sps:$4 sm:$0xff]  }
 0x212   :  { %1403 = vmatprep.subr.bf16.mxu1 %v4776_v36  ;;  %v4863_v36 = vld [vmem:[#allocation11 + $0x464] ss:$8 sps:$4 sm:$0xff]  }
 0x215   :  { %1404 = vmatpush1.bf16.msra.mxu1 %v4774_v37  ;;  %v4861_v37 = vld [vmem:[#allocation11 + $0x460] ss:$8 sps:$4 sm:$0xff]  }
 0x216   :  { %1405 = vmatprep.subr.bf16.mxu1 %v4779_v38  ;;  %v4866_v38 = vld [vmem:[#allocation11 + $0x474] ss:$8 sps:$4 sm:$0xff]  }
 0x219   :  { %1406 = vmatpush1.bf16.msra.mxu1 %v4777_v39  ;;  %v4864_v39 = vld [vmem:[#allocation11 + $0x470] ss:$8 sps:$4 sm:$0xff]  }
 0x21a   :  { %1407 = vmatprep.subr.bf16.mxu1 %v4782_v42  ;;  %v4869_v42 = vld [vmem:[#allocation11 + $0x484] ss:$8 sps:$4 sm:$0xff]  }
 0x21d   :  { %1408 = vmatpush1.bf16.msra.mxu1 %v4780_v44  ;;  %v4867_v44 = vld [vmem:[#allocation11 + $0x480] ss:$8 sps:$4 sm:$0xff]  }
 0x21e   :  { %1409 = vmatprep.subr.bf16.mxu1 %v4785_v45  ;;  %v4872_v45 = vld [vmem:[#allocation11 + $0x494] ss:$8 sps:$4 sm:$0xff]  }
 0x221   :  { %1410 = vmatpush1.bf16.msra.mxu1 %v4783_v46  ;;  %v4870_v46 = vld [vmem:[#allocation11 + $0x490] ss:$8 sps:$4 sm:$0xff]  }
 0x222   :  { %1411 = vmatprep.subr.bf16.mxu1 %v4788_v47  ;;  %v4875_v47 = vld [vmem:[#allocation11 + $0x4a4] ss:$8 sps:$4 sm:$0xff]  }
 0x225   :  { %1412 = vmatpush1.bf16.msra.mxu1 %v4786_v48  ;;  %v4873_v48 = vld [vmem:[#allocation11 + $0x4a0] ss:$8 sps:$4 sm:$0xff]  }
 0x226   :  { %1629 = vmatprep.subr.bf16.mxu1 %v4791_v49  ;;  %v4878_v49 = vld [vmem:[#allocation11 + $0x4b4] ss:$8 sps:$4 sm:$0xff]  }
 0x228   :  { %1414 = vmatmul.mubr.bf16.vlgmr.msra.gmra.mrb[4].mxu1 %v3884_v51  ;;  %v4879_v51 = vld [vmem:[#allocation11 + $0x4c0] ss:$8 sps:$4 sm:$0xff]  }
 0x229   :  { %1630 = vmatpush1.bf16.msra.mxu1 %v4789_v50  ;;  %1661 = vmatprep.mubr.bf16.mxu1 %v1466_v53  ;;  %v4881_v50 = vld [vmem:[#allocation11 + $0x4c4] ss:$8 sps:$4 sm:$0xff]   ;;  %v4882_v53 = vld [vmem:[#allocation11 + $0x4d0] ss:$8 sps:$4 sm:$0xff]  }
 0x22a   :  { %1631 = vmatprep.subr.bf16.mxu1 %v4797_v52  ;;  %v4884_v52 = vld [vmem:[#allocation11 + $0x4d4] ss:$8 sps:$4 sm:$0xff]  }
 0x22d   :  { %1632 = vmatpush1.bf16.msra.mxu1 %v4795_v54  ;;  %v4887_v54 = vld [vmem:[#allocation11 + $0x4e4] ss:$8 sps:$4 sm:$0xff]  }
 0x22e   :  { %1633 = vmatprep.subr.bf16.mxu1 %v4800_v55  ;;  %v4885_v55 = vld [vmem:[#allocation11 + $0x4e0] ss:$8 sps:$4 sm:$0xff]  }
 0x231   :  { %1634 = vmatpush1.bf16.msra.mxu1 %v4798_v56  ;;  %v4890_v56 = vld [vmem:[#allocation11 + $0x4f4] ss:$8 sps:$4 sm:$0xff]  }
 0x232   :  { %1635 = vmatprep.subr.bf16.mxu1 %v4803_v57  ;;  %v4888_v57 = vld [vmem:[#allocation11 + $0x4f0] ss:$8 sps:$4 sm:$0xff]  }
 0x235   :  { %1636 = vmatpush1.bf16.msra.mxu1 %v4801_v58  ;;  %v4843_v58 = vld [vmem:[#allocation2] ss:$8 sps:$4 sm:$0x3c]  }
 0x236   :  { %1637 = vmatprep.subr.bf16.mxu1 %v4806_v59  ;;  %v1965_v59 = vrot.slane %v4843_v58, 2 }
 0x239   :  { %1638 = vmatpush1.bf16.msra.mxu1 %v4804_v60 }
 0x23a   :  { %1639 = vmatprep.subr.bf16.mxu1 %v4809_v61 }
 0x23d   :  { %1640 = vmatpush1.bf16.msra.mxu1 %v4807_v62 }
 0x23e   :  { %1641 = vmatprep.subr.bf16.mxu1 %v4812_v63 }
 0x241   :  { %1642 = vmatpush1.bf16.msra.mxu1 %v4810_v1 }
 0x242   :  { %1643 = vmatprep.subr.bf16.mxu1 %v4815_v2  ;;  %v4891_v2 = vld [vmem:[#allocation14 + $0xc0] sm:$0xff]  }
 0x243   :  { %4226 = vmatprep.subr.bf16.mxu0 %v4891_v2 }
 0x245   :  { %1644 = vmatpush1.bf16.msra.mxu1 %v4813_v3  ;;  %v4892_v3 = vld [vmem:[#allocation14 + $0x80] sm:$0xff]  }
 0x246   :  { %1645 = vmatprep.subr.bf16.mxu1 %v4818_v4  ;;  %v4893_v4 = vld [vmem:[#allocation14 + $0xc8] sm:$0xff]   ;;  %4227 = vmatpush3.bf16.msra.mxu0 %v4892_v3 }
 0x247   :  { %4228 = vmatprep.subr.bf16.mxu0 %v4893_v4 }
 0x249   :  { %1646 = vmatpush1.bf16.msra.mxu1 %v4816_v5 }
 0x24a   :  { %1647 = vmatprep.subr.bf16.mxu1 %v4821_v6  ;;  %v4894_v6 = vld [vmem:[#allocation14 + $0x140] sm:$0xff]  }
 0x24d   :  { %1648 = vmatpush1.bf16.msra.mxu1 %v4819_v7  ;;  %v4896_v7 = vld [vmem:[#allocation14 + $0x100] sm:$0xff]  }
 0x24e   :  { %1649 = vmatprep.subr.bf16.mxu1 %v4824_v8 }
 0x251   :  { %1650 = vmatpush1.bf16.msra.mxu1 %v4822_v9  ;;  %v4898_v9 = vld [vmem:[#allocation14 + $0x148] sm:$0xff]  }
 0x252   :  { %1651 = vmatprep.subr.bf16.mxu1 %v4827_v10 }
 0x255   :  { %1652 = vmatpush1.bf16.msra.mxu1 %v4825_v11  ;;  %v4895_v11 = vld [vmem:[#allocation14 + $0x88] sm:$0xff]  }
 0x256   :  { %1653 = vmatprep.subr.bf16.mxu1 %v4830_v12  ;;  %v4897_v12 = vld [vmem:[#allocation14 + $0xd0] sm:$0xff]   ;;  %4229 = vmatpush3.bf16.msra.mxu0 %v4895_v11 }
 0x257   :  { %4230 = vmatprep.subr.bf16.mxu0 %v4897_v12 }
 0x259   :  { %1654 = vmatpush1.bf16.msra.mxu1 %v4828_v13  ;;  %v4900_v13 = vld [vmem:[#allocation14 + $0x108] sm:$0xff]  }
 0x25a   :  { %1655 = vmatprep.subr.bf16.mxu1 %v4833_v14  ;;  %v4899_v14 = vld [vmem:[#allocation14 + $0x90] sm:$0xff]  }
 0x25b   :  { %4231 = vmatpush3.bf16.msra.mxu0 %v4899_v14 }
 0x25d   :  { %1656 = vmatpush1.bf16.msra.mxu1 %v4831_v15 }
 0x25e   :  { %1657 = vmatprep.subr.bf16.mxu1 %v4836_v16 }
 0x261   :  { %1658 = vmatpush1.bf16.msra.mxu1 %v4834_v17 }
 0x262   :  { %1659 = vmatprep.subr.bf16.mxu1 %v4839_v18 }
 0x265   :  { %1660 = vmatpush1.bf16.msra.mxu1 %v4837_v19 }
 0x266   :  { %2129 = vmatprep.subr.bf16.mxu1 %v4842_v21  ;;  %v4901_v21 = vld [vmem:[#allocation14 + $0xd8] sm:$0xff]  }
 0x267   :  { %4232 = vmatprep.subr.bf16.mxu0 %v4901_v21  ;;  %v4933_v21 = vld [vmem:[#allocation14 + $0x8] sm:$0xff]  }
 0x268   :  { %1662 = vmatmul.mubr.bf16.vlgmr.msra.gmra.mrb[8].mxu1 %v1465_v24  ;;  %v4904_v24 = vld [vmem:[#allocation14 + $0x110] sm:$0xff]  }
 0x269   :  { %2130 = vmatpush1.bf16.msra.mxu1 %v4840_v23  ;;  %2161 = vmatprep.mubr.bf16.mxu1 %v1966_v26  ;;  %v4903_v23 = vld [vmem:[#allocation14 + $0x98] sm:$0xff]  }
 0x26a   :  { %2131 = vmatprep.subr.bf16.mxu1 %v4848_v25  ;;  %4233 = vmatpush3.bf16.msra.mxu0 %v4903_v23  ;;  %v4905_v25 = vld [vmem:[#allocation14 + $0xe0] sm:$0xff]   ;;  %v4906_v26 = vld [vmem:[#allocation14 + $0x158] sm:$0xff]   ;;  %v4937_v23 = vld [vmem:[#allocation14 + $0x50] sm:$0xff]  }
 0x26b   :  { %4234 = vmatprep.subr.bf16.mxu0 %v4905_v25 }
 0x26d   :  { %2132 = vmatpush1.bf16.msra.mxu1 %v4846_v27  ;;  %v4907_v27 = vld [vmem:[#allocation14 + $0xa0] sm:$0xff]  }
 0x26e   :  { %2133 = vmatprep.subr.bf16.mxu1 %v4851_v28  ;;  %v4908_v28 = vld [vmem:[#allocation14 + $0x118] sm:$0xff]   ;;  %4235 = vmatpush3.bf16.msra.mxu0 %v4907_v27  ;;  %v4940_v27 = vld [vmem:[#allocation14 + $0x208] sm:$0xff]  }
 0x271   :  { %2134 = vmatpush1.bf16.msra.mxu1 %v4849_v29  ;;  %v4909_v29 = vld [vmem:[#allocation14 + $0xe8] sm:$0xff]  }
 0x272   :  { %2135 = vmatprep.subr.bf16.mxu1 %v4854_v30  ;;  %v4910_v30 = vld [vmem:[#allocation14 + $0x160] sm:$0xff]   ;;  %4236 = vmatprep.subr.bf16.mxu0 %v4909_v29  ;;  %v4942_v29 = vld [vmem:[#allocation14 + $0x250] sm:$0xff]  }
 0x275   :  { %2136 = vmatpush1.bf16.msra.mxu1 %v4852_v31  ;;  %v4911_v31 = vld [vmem:[#allocation14 + $0xa8] sm:$0xff]  }
 0x276   :  { %2137 = vmatprep.subr.bf16.mxu1 %v4857_v32  ;;  %v4912_v32 = vld [vmem:[#allocation14 + $0x120] sm:$0xff]   ;;  %4237 = vmatpush3.bf16.msra.mxu0 %v4911_v31  ;;  %v4944_v31 = vld [vmem:[#allocation14 + $0x210] sm:$0xff]  }
 0x279   :  { %2138 = vmatpush1.bf16.msra.mxu1 %v4855_v33  ;;  %v4913_v33 = vld [vmem:[#allocation14 + $0xf0] sm:$0xff]  }
 0x27a   :  { %2139 = vmatprep.subr.bf16.mxu1 %v4860_v34  ;;  %v4914_v34 = vld [vmem:[#allocation14 + $0x168] sm:$0xff]   ;;  %4238 = vmatprep.subr.bf16.mxu0 %v4913_v33  ;;  %v4946_v33 = vld [vmem:[#allocation14 + $0x258] sm:$0xff]  }
 0x27d   :  { %2140 = vmatpush1.bf16.msra.mxu1 %v4858_v35  ;;  %v4915_v35 = vld [vmem:[#allocation14 + $0xb0] sm:$0xff]  }
 0x27e   :  { %2141 = vmatprep.subr.bf16.mxu1 %v4863_v36  ;;  %v4916_v36 = vld [vmem:[#allocation14 + $0x128] sm:$0xff]   ;;  %4239 = vmatpush3.bf16.msra.mxu0 %v4915_v35  ;;  %v4948_v35 = vld [vmem:[#allocation14 + $0x218] sm:$0xff]  }
 0x281   :  { %2142 = vmatpush1.bf16.msra.mxu1 %v4861_v37  ;;  %v4917_v37 = vld [vmem:[#allocation14 + $0xf8] sm:$0xff]  }
 0x282   :  { %2143 = vmatprep.subr.bf16.mxu1 %v4866_v38  ;;  %v4918_v38 = vld [vmem:[#allocation14 + $0x170] sm:$0xff]   ;;  %4240 = vmatprep.subr.bf16.mxu0 %v4917_v37  ;;  %v4950_v37 = vld [vmem:[#allocation14 + $0x260] sm:$0xff]  }
 0x285   :  { %2144 = vmatpush1.bf16.msra.mxu1 %v4864_v39  ;;  %v4919_v39 = vld [vmem:[#allocation14 + $0xb8] sm:$0xff]  }
 0x286   :  { %2145 = vmatprep.subr.bf16.mxu1 %v4869_v42  ;;  %v4920_v42 = vld [vmem:[#allocation14 + $0x130] sm:$0xff]   ;;  %4241 = vmatpush3.bf16.msra.mxu0 %v4919_v39  ;;  %v4952_v39 = vld [vmem:[#allocation14 + $0x220] sm:$0xff]  }
 0x289   :  { %2146 = vmatpush1.bf16.msra.mxu1 %v4867_v44  ;;  %v4923_v44 = vld [vmem:[#allocation14 + $0x40] sm:$0xff]  }
 0x28a   :  { %2147 = vmatprep.subr.bf16.mxu1 %v4872_v45  ;;  %v4924_v45 = vld [vmem:[#allocation14 + $0x178] sm:$0xff]   ;;  %4248 = vmatprep.subr.bf16.mxu0 %v4923_v44  ;;  %v4954_v44 = vld [vmem:[#allocation14 + $0x268] sm:$0xff]  }
 0x28d   :  { %2148 = vmatpush1.bf16.msra.mxu1 %v4870_v46  ;;  %v4926_v46 = vld [vmem:[#allocation14 + $0x138] sm:$0xff]  }
 0x28e   :  { %2149 = vmatprep.subr.bf16.mxu1 %v4875_v47  ;;  %v4932_v47 = vld [vmem:[#allocation14 + $0x240] sm:$0xff]  }
 0x291   :  { %2150 = vmatpush1.bf16.msra.mxu1 %v4873_v48 }
 0x292   :  { %2151 = vmatprep.subr.bf16.mxu1 %v4878_v49 }
 0x295   :  { %2152 = vmatpush1.bf16.msra.mxu1 %v4876_v0 }
 0x296   :  { %2153 = vmatprep.subr.bf16.mxu1 %v4881_v50 }
 0x299   :  { %2154 = vmatpush1.bf16.msra.mxu1 %v4879_v51 }
 0x29a   :  { %2155 = vmatprep.subr.bf16.mxu1 %v4884_v52 }
 0x29d   :  { %2156 = vmatpush1.bf16.msra.mxu1 %v4882_v53 }
 0x29e   :  { %2157 = vmatprep.subr.bf16.mxu1 %v4887_v54 }
 0x2a1   :  { %2158 = vmatpush1.bf16.msra.mxu1 %v4885_v55  ;;  %v2172_v55 = vld [vmem:[#allocation13] sm:$0x3] }
 0x2a2   :  { %2159 = vmatprep.subr.bf16.mxu1 %v4890_v56  ;;  %v2177_v56 = vrot.slane %v2172_v55, %v882_v41  ;;  %v2181_v58 = vrot.slane %v2172_v55, %v886_v43 }
 0x2a5   :  { %2160 = vmatpush1.bf16.msra.mxu1 %v4888_v57 }
 0x2a6   :  { %4270 = vmatprep.subr.bf16.mxu1 %v4894_v6 }
 0x2a8   :  { %2162 = vmatmul.mubr.bf16.vlgmr.msra.gmra.mrb[12].mxu1 %v1965_v59 }
 0x2a9   :  { %4271 = vmatpush3.bf16.msra.mxu1 %v4896_v7 }
 0x2aa   :  { %4272 = vmatprep.subr.bf16.mxu1 %v4898_v9 }
 0x2ad   :  { %4273 = vmatpush3.bf16.msra.mxu1 %v4900_v13  ;;  %v4929_v13 = vld [vmem:[#allocation14 + $0x48] sm:$0xff]  }
 0x2ae   :  { %4274 = vmatprep.subr.bf16.mxu1 %v4902_v22  ;;  %v4934_v22 = vld [vmem:[#allocation14 + $0x200] sm:$0xff]  }
 0x2b1   :  { %4275 = vmatpush3.bf16.msra.mxu1 %v4904_v24  ;;  %v4938_v24 = vld [vmem:[#allocation14 + $0x248] sm:$0xff]  }
 0x2b2   :  { %4276 = vmatprep.subr.bf16.mxu1 %v4906_v26  ;;  %v4939_v26 = vld [vmem:[#allocation14 + $0x10] sm:$0xff]  }
 0x2b5   :  { %4277 = vmatpush3.bf16.msra.mxu1 %v4908_v28  ;;  %v4941_v28 = vld [vmem:[#allocation14 + $0x58] sm:$0xff]  }
 0x2b6   :  { %4278 = vmatprep.subr.bf16.mxu1 %v4910_v30  ;;  %v4943_v30 = vld [vmem:[#allocation14 + $0x18] sm:$0xff]  }
 0x2b9   :  { %4279 = vmatpush3.bf16.msra.mxu1 %v4912_v32  ;;  %v4945_v32 = vld [vmem:[#allocation14 + $0x60] sm:$0xff]  }
 0x2ba   :  { %4280 = vmatprep.subr.bf16.mxu1 %v4914_v34  ;;  %v4947_v34 = vld [vmem:[#allocation14 + $0x20] sm:$0xff]  }
 0x2bb   :  { %v1207_v60 = vpop.f32.mrb[0].mxu1 }
 0x2bc   :  { %v1209_v61 = vpop.f32.mrb[1].mxu1 }
 0x2bd   :  { %v1211_v62 = vpop.f32.mrb[2].mxu1  ;;  %v5592_v63 = vpop.f32.mrb[4].mxu0  ;;  %4281 = vmatpush3.bf16.msra.mxu1 %v4916_v36  ;;  %v4949_v36 = vld [vmem:[#allocation14 + $0x68] sm:$0xff]  }
 0x2be   :  { %v1212_v1 = vpop.f32.mrb[3].mxu1  ;;  %v5594_v5 = vpop.f32.mrb[5].mxu0  ;;  %4282 = vmatprep.subr.bf16.mxu1 %v4918_v38  ;;  %v4951_v38 = vld [vmem:[#allocation14 + $0x28] sm:$0xff]  }
 0x2bf   :  { %v1917_v8 = vpop.f32.mrb[6].mxu0 }
 0x2c0   :  { %v1918_v10 = vpop.f32.mrb[7].mxu0 }
 0x2c1   :  { %4283 = vmatpush3.bf16.msra.mxu1 %v4920_v42  ;;  %v4925_v10 = vld [vmem:[#allocation14] sm:$0xff]   ;;  %v4953_v42 = vld [vmem:[#allocation14 + $0x70] sm:$0xff]  }
 0x2c2   :  { %4284 = vmatprep.subr.bf16.mxu1 %v4924_v45  ;;  %v4955_v45 = vld [vmem:[#allocation14 + $0x30] sm:$0xff]  }
 0x2c5   :  { %4285 = vmatpush3.bf16.msra.mxu1 %v4926_v46  ;;  %v4956_v46 = vld [vmem:[#allocation14 + $0x228] sm:$0xff]  }
 0x2c6   :  { %4314 = vmatprep.subr.bf16.mxu1 %v4932_v47  ;;  %v4957_v47 = vld [vmem:[#allocation14 + $0x78] sm:$0xff]  }
 0x2fb   :  { %v1415_v15 = vpop.f32.mrb[4].mxu1 }
 0x2fc   :  { %v1416_v16 = vadd.f32 %v1415_v15, %v1207_v60  ;;  %v1417_v17 = vpop.f32.mrb[5].mxu1 }
 0x2fd   :  { %v1418_v18 = vadd.f32 %v1417_v17, %v1209_v61  ;;  %v1419_v19 = vpop.f32.mrb[6].mxu1 }
 0x2fe   :  { %v1420_v20 = vpop.f32.mrb[7].mxu1 }
 0x33b   :  { %v1663_v48 = vpop.f32.mrb[8].mxu1 }
 0x33c   :  { %v1670_v49 = vadd.f32 %v1663_v48, %v1416_v16  ;;  %v1665_v0 = vpop.f32.mrb[9].mxu1  ;;  %v4958_v48 = vld [vmem:[#allocation14 + $0x270] sm:$0xff]  }
 0x33d   :  { %v1671_v50 = vadd.f32 %v1665_v0, %v1418_v18  ;;  %v1667_v51 = vpop.f32.mrb[10].mxu1  ;;  %v4959_v0 = vld [vmem:[#allocation14 + $0x38] sm:$0xff]  }
 0x33e   :  { %v1668_v52 = vpop.f32.mrb[11].mxu1  ;;  %v1920_v53 = vadd.f32 %v5592_v63, %v1670_v49  ;;  %v4961_v51 = vld [vmem:[#allocation14 + $0x1c0] sm:$0xff]  }
 0x33f   :  { %v1921_v54 = vadd.f32 %v5594_v5, %v1671_v50  ;;  %v4960_v50 = vld [vmem:[#allocation14 + $0x230] sm:$0xff]   ;;  %v4962_v52 = vld [vmem:[#allocation14 + $0x278] sm:$0xff]  }
 0x37b   :  { %v2163_v57 = vpop.f32.mrb[12].mxu1 }
 0x37c   :  { %v2170_v59 = vadd.f32 %v2163_v57, %v1920_v53  ;;  %v2165_v60 = vpop.f32.mrb[13].mxu1  ;;  %v4967_v57 = vld [vmem:[#allocation14 + $0x1c8] sm:$0xff]  }
 0x37d   :  { %v2171_v61 = vadd.f32 %v2165_v60, %v1921_v54  ;;  %v2167_v62 = vpop.f32.mrb[14].mxu1  ;;  %v4963_v54 = vld [vmem:[#allocation14 + $0x180] sm:$0xff]   ;;  %v4968_v60 = vld [vmem:[#allocation14 + $0x188] sm:$0xff]  }
 0x37e   :  { %v2184_v1 = vadd.f32 %v2177_v56, %v2170_v59  ;;  %v2168_v2 = vpop.f32.mrb[15].mxu1  ;;  %v4966_v56 = vld [vmem:[#allocation14 + $0x238] sm:$0xff]  }
 0x37f   :  { %v2185_v3 = vadd.f32 %v2181_v58, %v2171_v61  ;;  %v4969_v61 = vld [vmem:[#allocation14 + $0x1d0] sm:$0xff]   ;;  %v4971_v2 = vld [vmem:[#allocation14 + $0x1d8] sm:$0xff]  }
 0x380   :  { %v2186_v4 = vmul.f32 0.2, %v2184_v1 }
 0x381   :  { %v2187_v6 = vmul.f32 0.2, %v2185_v3 }
 0x382   :  { %v2188_v63 = vmax.f32 %v2184_v1, %v2186_v4  ;;  %v4970_v1 = vld [vmem:[#allocation14 + $0x190] sm:$0xff]   ;;  %v4973_v4 = vld [vmem:[#allocation14 + $0x1e0] sm:$0xff]  }
 0x383   :  { %v2189_v7 = vmax.f32 %v2185_v3, %v2187_v6  ;;  %v4972_v3 = vld [vmem:[#allocation14 + $0x198] sm:$0xff]   ;;  %v4974_v6 = vld [vmem:[#allocation14 + $0x1a0] sm:$0xff]  }
 0x385   :  { %v4224_v5 = vpack.c.bf16 %v2189_v7, %v2188_v63  ;;  %v4975_v63 = vld [vmem:[#allocation14 + $0x1e8] sm:$0xff]  }
 0x386   :  { %v4976_v7 = vld [vmem:[#allocation14 + $0x1a8] sm:$0xff]  }
 0x387   :  { %v2197_v8 = vrot.slane %v4224_v5, 7  ;;  %2201 = vst [vmem:[#allocation5] sm:$0x22] %v4224_v5  ;;  %2202 = vst [vmem:[#allocation4] sm:$0x44] %v4224_v5  ;;  %v4021_v41 = vrot.slane %v4224_v5, 9 }
 0x388   :  { %v4977_v5 = vld [vmem:[#allocation14 + $0x1f0] sm:$0xff]  }
 0x389   :  { %2199 = vst [vmem:[#allocation4] sm:$0x22] %v2197_v8  ;;  %2206 = vst [vmem:[#allocation5] sm:$0x44] %v4021_v41  ;;  %v4978_v8 = vld [vmem:[#allocation14 + $0x1b0] sm:$0xff]   ;;  %v4979_v41 = vld [vmem:[#allocation14 + $0x1f8] sm:$0xff]  }
 0x38e   :  { %v2240_v40 = vld [vmem:[#allocation5] sm:$0x33]  ;;  %v5602_v11 = vld [vmem:[#allocation4] sm:$0xcc] }
 0x38f   :  { %v4022_v43 = vcombine.low %v2240_v40, %v2240_v40  ;;  %v4023_v9 = vcombine.high %v2240_v40, %v2240_v40  ;;  %v4095_v18 = vcombine.high %v5602_v11, %v5602_v11  ;;  %v4094_v58 = vcombine.low %v5602_v11, %v5602_v11  ;;  %v4980_v40 = vld [vmem:[#allocation14 + $0x1b8] sm:$0xff]   ;;  %v4982_v11 = vld [vmem:[%s5804_s8] sm:$0xff]  }
 0x390   :  { %v5604_v12 = vld [vmem:[#allocation4] sm:$0x33]  ;;  %v2740_v49 = vld [vmem:[#allocation5] sm:$0x66] }
 0x391   :  { %v2560_v14 = vld [vmem:[#allocation4] sm:$0x66]  ;;  %2409 = vmatprep.mubr.bf16.mxu0 %v4023_v9  ;;  %v4041_v15 = vcombine.high %v5604_v12, %v5604_v12  ;;  %v2960_v25 = vrot.slane %v4095_v18, 2  ;;  %v4077_v53 = vcombine.high %v2740_v49, %v2740_v49  ;;  %v4040_v55 = vcombine.low %v5604_v12, %v5604_v12  ;;  %v4988_v18 = vld [vmem:[%s5804_s8 + $0x18] sm:$0xff]  }
 0x392   :  { %v4058_v16 = vcombine.low %v2560_v14, %v2560_v14  ;;  %v4059_v17 = vcombine.high %v2560_v14, %v2560_v14  ;;  %2410 = vmatmul.mubr.bf16.vlgmr.msra.gmra.mrb[8].mxu0 %v4022_v43  ;;  %v2959_v62 = vrot.slane %v4094_v58, 2  ;;  %v4076_v43 = vcombine.low %v2740_v49, %v2740_v49  ;;  %v4984_v14 = vld [vmem:[%s5804_s8 + $0x8] sm:$0xff]  }
 0x393   :  { %4249 = vmatpush3.bf16.msra.mxu0 %v4925_v10  ;;  %2552 = vmatprep.mubr.bf16.mxu0 %v4041_v15  ;;  %v2780_v59 = vrot.slane %v4077_v53, 1  ;;  %v4981_v10 = vld [vmem:[%s5804_s8 + $0x40] sm:$0xff]   ;;  %v5174_v12 = vmov 0.0   ;;  %v4985_v15 = vld [vmem:[%s5804_s8 + $0x50] sm:$0xff]  }
 0x394   :  { %v2599_v19 = vrot.slane %v4058_v16, 1  ;;  %v2600_v20 = vrot.slane %v4059_v17, 1  ;;  %4250 = vmatprep.subr.bf16.mxu0 %v4929_v13  ;;  %v2779_v9 = vrot.slane %v4076_v43, 1  ;;  %v4983_v13 = vld [vmem:[%s5804_s8 + $0x48] sm:$0xff]   ;;  %v4986_v16 = vld [vmem:[%s5804_s8 + $0x10] sm:$0xff]   ;;  %v4987_v17 = vld [vmem:[%s5804_s8 + $0x58] sm:$0xff]  }
 0x395   :  { %v5018_v43 = vld [vmem:[%s5804_s8 + $0x118] sm:$0xff]  }
 0x396   :  { %2731 = vmatprep.mubr.bf16.mxu1 %v2600_v20  ;;  %v4990_v20 = vld [vmem:[%s5804_s8 + $0x20] sm:$0xff]  }
 0x397   :  { %2732 = vmatmul.mubr.bf16.vlgmr.msra.gmra.mrb[16].mxu1 %v2599_v19  ;;  %4251 = vmatpush3.bf16.msra.mxu0 %v4933_v21  ;;  %v4989_v19 = vld [vmem:[%s5804_s8 + $0x60] sm:$0xff]   ;;  %v4991_v21 = vld [vmem:[%s5804_s8 + $0x68] sm:$0xff]  }
 0x398   :  { %4315 = vmatpush3.bf16.msra.mxu1 %v4934_v22  ;;  %3091 = vmatprep.mubr.bf16.mxu1 %v2960_v25  ;;  %v4992_v22 = vld [vmem:[%s5804_s8 + $0x28] sm:$0xff]   ;;  %v4995_v25 = vld [vmem:[%s5804_s8 + $0x78] sm:$0xff]  }
 0x399   :  { %4252 = vmatprep.subr.bf16.mxu0 %v4937_v23  ;;  %4316 = vmatprep.subr.bf16.mxu1 %v4938_v24  ;;  %v4993_v23 = vld [vmem:[%s5804_s8 + $0x70] sm:$0xff]  }
 0x39a   :  { %v4994_v24 = vld [vmem:[%s5804_s8 + $0x30] sm:$0xff]  }
 0x39b   :  { %4253 = vmatpush3.bf16.msra.mxu0 %v4939_v26  ;;  %v4996_v26 = vld [vmem:[%s5804_s8 + $0x38] sm:$0xff]  }
 0x39c   :  { %4317 = vmatpush3.bf16.msra.mxu1 %v4940_v27  ;;  %4254 = vmatprep.subr.bf16.mxu0 %v4941_v28  ;;  %v3135_v27 = vld [vmem:[#allocation7] sm:$0x1]  ;;  %v4998_v28 = vld [vmem:[%s5804_s8 + $0x80] sm:$0xff]  }
 0x39d   :  { %4318 = vmatprep.subr.bf16.mxu1 %v4942_v29  ;;  %v3118_v29 = vld [vmem:[#allocation6] sm:$0x1] }
 0x39f   :  { %4255 = vmatpush3.bf16.msra.mxu0 %v4943_v30  ;;  %v4997_v30 = vld [vmem:[%s5804_s8 + $0xc0] sm:$0xff]  }
 0x3a0   :  { %4319 = vmatpush3.bf16.msra.mxu1 %v4944_v31  ;;  %4256 = vmatprep.subr.bf16.mxu0 %v4945_v32  ;;  %v4999_v31 = vld [vmem:[%s5804_s8 + $0xc8] sm:$0xff]  }
 0x3a1   :  { %4320 = vmatprep.subr.bf16.mxu1 %v4946_v33  ;;  %v5000_v32 = vld [vmem:[%s5804_s8 + $0x88] sm:$0xff]   ;;  %v5001_v33 = vld [vmem:[%s5804_s8 + $0xd0] sm:$0xff]  }
 0x3a3   :  { %4257 = vmatpush3.bf16.msra.mxu0 %v4947_v34  ;;  %v5002_v34 = vld [vmem:[%s5804_s8 + $0x90] sm:$0xff]  }
 0x3a4   :  { %4321 = vmatpush3.bf16.msra.mxu1 %v4948_v35  ;;  %4258 = vmatprep.subr.bf16.mxu0 %v4949_v36  ;;  %v5003_v35 = vld [vmem:[%s5804_s8 + $0xd8] sm:$0xff]  }
 0x3a5   :  { %4322 = vmatprep.subr.bf16.mxu1 %v4950_v37  ;;  %v5004_v36 = vld [vmem:[%s5804_s8 + $0x98] sm:$0xff]   ;;  %v5005_v37 = vld [vmem:[%s5804_s8 + $0xe0] sm:$0xff]  }
 0x3a7   :  { %4259 = vmatpush3.bf16.msra.mxu0 %v4951_v38  ;;  %v5006_v38 = vld [vmem:[%s5804_s8 + $0xa0] sm:$0xff]  }
 0x3a8   :  { %4323 = vmatpush3.bf16.msra.mxu1 %v4952_v39  ;;  %4260 = vmatprep.subr.bf16.mxu0 %v4953_v42  ;;  %v5007_v39 = vld [vmem:[%s5804_s8 + $0xe8] sm:$0xff]  }
 0x3a9   :  { %4324 = vmatprep.subr.bf16.mxu1 %v4954_v44  ;;  %v5008_v42 = vld [vmem:[%s5804_s8 + $0xa8] sm:$0xff]   ;;  %v5009_v44 = vld [vmem:[%s5804_s8 + $0xf0] sm:$0xff]  }
 0x3ab   :  { %4261 = vmatpush3.bf16.msra.mxu0 %v4955_v45  ;;  %v5010_v45 = vld [vmem:[%s5804_s8 + $0xb0] sm:$0xff]  }
 0x3ac   :  { %4325 = vmatpush3.bf16.msra.mxu1 %v4956_v46  ;;  %4262 = vmatprep.subr.bf16.mxu0 %v4957_v47  ;;  %v5011_v46 = vld [vmem:[%s5804_s8 + $0xf8] sm:$0xff]  }
 0x3ad   :  { %4326 = vmatprep.subr.bf16.mxu1 %v4958_v48  ;;  %v5012_v47 = vld [vmem:[%s5804_s8 + $0xb8] sm:$0xff]  }
 0x3af   :  { %4263 = vmatpush3.bf16.msra.mxu0 %v4959_v0 }
 0x3b0   :  { %4327 = vmatpush3.bf16.msra.mxu1 %v4960_v50  ;;  %4292 = vmatprep.subr.bf16.mxu0 %v4961_v51 }
 0x3b1   :  { %4328 = vmatprep.subr.bf16.mxu1 %v4962_v52 }
 0x3b2   :  { %2553 = vmatmul.mubr.bf16.vlgmr.msra.gmra.mrb[12].mxu0 %v4040_v55 }
 0x3b3   :  { %4293 = vmatpush3.bf16.msra.mxu0 %v4963_v54  ;;  %2911 = vmatprep.mubr.bf16.mxu0 %v2780_v59 }
 0x3b4   :  { %4329 = vmatpush3.bf16.msra.mxu1 %v4966_v56  ;;  %4294 = vmatprep.subr.bf16.mxu0 %v4967_v57 }
 0x3b5   :  { %4401 = vmatprep.subr.bf16.mxu1 %v5174_v12 }
 0x3b7   :  { %3092 = vmatmul.mubr.bf16.vlgmr.msra.gmra.mrb[20].mxu1 %v2959_v62  ;;  %4295 = vmatpush3.bf16.msra.mxu0 %v4968_v60 }
 0x3b8   :  { %4296 = vmatprep.subr.bf16.mxu0 %v4969_v61  ;;  %4402 = vmatpush3.bf16.msra.mxu1 %v4982_v11  ;;  %v5021_v11 = vld [vmem:[%s5804_s8 + $0x130] sm:$0xff]  }
 0x3b9   :  { %4403 = vmatprep.subr.bf16.mxu1 %v5174_v12  ;;  %4417 = vmatprep.mubr.msk.bf16.mxu1 %vm5175_vm2, %v5174_v12 }
 0x3bb   :  { %4297 = vmatpush3.bf16.msra.mxu0 %v4970_v1 }
 0x3bc   :  { %4298 = vmatprep.subr.bf16.mxu0 %v4971_v2  ;;  %4404 = vmatpush3.bf16.msra.mxu1 %v4984_v14  ;;  %v5022_v14 = vld [vmem:[%s5804_s8 + $0x138] sm:$0xff]  }
 0x3bd   :  { %4405 = vmatprep.subr.bf16.mxu1 %v5174_v12 }
 0x3bf   :  { %4299 = vmatpush3.bf16.msra.mxu0 %v4972_v3 }
 0x3c0   :  { %4300 = vmatprep.subr.bf16.mxu0 %v4973_v4  ;;  %4406 = vmatpush3.bf16.msra.mxu1 %v4986_v16 }
 0x3c1   :  { %4407 = vmatprep.subr.bf16.mxu1 %v5174_v12 }
 0x3c3   :  { %4301 = vmatpush3.bf16.msra.mxu0 %v4974_v6  ;;  %v5013_v6 = vld [vmem:[#allocation7] ss:$0 sps:$4 sm:$0x22]  }
 0x3c4   :  { %4302 = vmatprep.subr.bf16.mxu0 %v4975_v63  ;;  %4408 = vmatpush3.bf16.msra.mxu1 %v4988_v18  ;;  %v3462_v63 = vrot.slane %v5013_v6, 1 }
 0x3c5   :  { %4409 = vmatprep.subr.bf16.mxu1 %v5174_v12 }
 0x3c7   :  { %4303 = vmatpush3.bf16.msra.mxu0 %v4976_v7  ;;  %v5014_v7 = vld [vmem:[#allocation6] ss:$0 sps:$4 sm:$0x22]  }
 0x3c8   :  { %4304 = vmatprep.subr.bf16.mxu0 %v4977_v5  ;;  %4410 = vmatpush3.bf16.msra.mxu1 %v4990_v20  ;;  %v5015_v5 = vld [vmem:[%s5804_s8 + $0x100] sm:$0xff]  }
 0x3c9   :  { %4411 = vmatprep.subr.bf16.mxu1 %v5174_v12 }
 0x3cb   :  { %4305 = vmatpush3.bf16.msra.mxu0 %v4978_v8  ;;  %v3350_v8 = vrot.slane %v5014_v7, 1 }
 0x3cc   :  { %4306 = vmatprep.subr.bf16.mxu0 %v4979_v41  ;;  %4412 = vmatpush3.bf16.msra.mxu1 %v4992_v22  ;;  %v5016_v41 = vld [vmem:[%s5804_s8 + $0x108] sm:$0xff]  }
 0x3cd   :  { %4413 = vmatprep.subr.bf16.mxu1 %v5174_v12 }
 0x3cf   :  { %4307 = vmatpush3.bf16.msra.mxu0 %v4980_v40  ;;  %v5017_v40 = vld [vmem:[%s5804_s8 + $0x110] sm:$0xff]  }
 0x3d0   :  { %4381 = vmatprep.subr.bf16.mxu0 %v5174_v12  ;;  %4414 = vmatpush3.bf16.msra.mxu1 %v4994_v24 }
 0x3d1   :  { %4415 = vmatprep.subr.bf16.mxu1 %v5174_v12 }
 0x3d2   :  { %2912 = vmatmul.mubr.bf16.vlgmr.msra.gmra.mrb[16].mxu0 %v2779_v9  ;;  %v5019_v9 = vld [vmem:[%s5804_s8 + $0x120] sm:$0xff]  }
 0x3d3   :  { %4382 = vmatpush3.bf16.msra.mxu0 %v4981_v10  ;;  %4397 = vmatprep.mubr.msk.bf16.mxu0 %vm5175_vm2, %v5174_v12  ;;  %v5020_v10 = vld [vmem:[%s5804_s8 + $0x128] sm:$0xff]   ;;  %s5176_s8 = smov [#allocation17]  }
 0x3d4   :  { %4383 = vmatprep.subr.bf16.mxu0 %v5174_v12  ;;  %4416 = vmatpush3.bf16.msra.mxu1 %v4996_v26  ;;  %s3683_s18 = sshll.u32 %s5176_s8, 4  ;;  %s3684_s18 = int_to_ptr.vmem [resolvable:$true] %s3683_s18 }
 0x3d5   :  { %4441 = vmatprep.subr.bf16.mxu1 %v5174_v12  ;;  %s5134_s19 = scalar_lea.vmem %s3684_s18, 32  ;;  %p5139_p13 = scmp.lt.s32.totalorder %s3684_s18, %s3684_s18 }
 0x3d6   :  { %p5135_p12 = scmp.ne.s32.totalorder %s3684_s18, %s5134_s19  ;;  %p5140_p0 = scmp.lt.s32.totalorder %s5134_s19, %s5134_s19 }
 0x3d7   :  { %4384 = vmatpush3.bf16.msra.mxu0 %v4983_v13  ;;  %4418 = vmatmul.mubr.bf16.vlgmr.msra.gmra.mrb[24].mxu1 %v3118_v29  ;;  %v5023_v13 = vld [vmem:[#allocation6] ss:$0 sps:$4 sm:$0x44]  }
 0x3d8   :  { %4385 = vmatprep.subr.bf16.mxu0 %v5174_v12  ;;  %4442 = vmatpush3.bf16.msra.mxu1 %v4997_v30  ;;  %p5141_p1 = por %p5140_p0, %p5139_p13 }
 0x3d9   :  { %4443 = vmatprep.subr.bf16.mxu1 %v5174_v12  ;;  %4457 = vmatprep.mubr.msk.bf16.mxu1 %vm5175_vm2, %v5174_v12 }
 0x3da   :  { %p5142_p2 = pnand %p5141_p1, %p5135_p12 }
 0x3db   :  { %4386 = vmatpush3.bf16.msra.mxu0 %v4985_v15  ;;  %v3574_v15 = vrot.slane %v5023_v13, 2 }
 0x3dc   :  { %4387 = vmatprep.subr.bf16.mxu0 %v5174_v12  ;;  %4444 = vmatpush3.bf16.msra.mxu1 %v4999_v31 }
 0x3dd   :  { %4445 = vmatprep.subr.bf16.mxu1 %v5174_v12 }
 0x3df   :  { %4388 = vmatpush3.bf16.msra.mxu0 %v4987_v17 }
 0x3e0   :  { %4389 = vmatprep.subr.bf16.mxu0 %v5174_v12  ;;  %4446 = vmatpush3.bf16.msra.mxu1 %v5001_v33 }
 0x3e1   :  { %4447 = vmatprep.subr.bf16.mxu1 %v5174_v12 }
 0x3e3   :  { %4390 = vmatpush3.bf16.msra.mxu0 %v4989_v19 }
 0x3e4   :  { %4391 = vmatprep.subr.bf16.mxu0 %v5174_v12  ;;  %4448 = vmatpush3.bf16.msra.mxu1 %v5003_v35  ;;  %v4221_v35 = vld [vmem:[#allocation16] ss:$0 sm:$0xff] }
 0x3e5   :  { %4449 = vmatprep.subr.bf16.mxu1 %v5174_v12 }
 0x3e7   :  { %4392 = vmatpush3.bf16.msra.mxu0 %v4991_v21 }
 0x3e8   :  { %4393 = vmatprep.subr.bf16.mxu0 %v5174_v12  ;;  %4450 = vmatpush3.bf16.msra.mxu1 %v5005_v37 }
 0x3e9   :  { %4451 = vmatprep.subr.bf16.mxu1 %v5174_v12 }
 0x3eb   :  { %4394 = vmatpush3.bf16.msra.mxu0 %v4993_v23 }
 0x3ec   :  { %4395 = vmatprep.subr.bf16.mxu0 %v5174_v12  ;;  %4452 = vmatpush3.bf16.msra.mxu1 %v5007_v39 }
 0x3ed   :  { %4453 = vmatprep.subr.bf16.mxu1 %v5174_v12 }
 0x3ef   :  { %4396 = vmatpush3.bf16.msra.mxu0 %v4995_v25 }
 0x3f0   :  { %4421 = vmatprep.subr.bf16.mxu0 %v5174_v12  ;;  %4454 = vmatpush3.bf16.msra.mxu1 %v5009_v44 }
 0x3f1   :  { %4455 = vmatprep.subr.bf16.mxu1 %v5174_v12 }
 0x3f2   :  { %4398 = vmatmul.mubr.bf16.vlgmr.msra.gmra.mrb[20].mxu0 %v3135_v27 }
 0x3f3   :  { %4422 = vmatpush3.bf16.msra.mxu0 %v4998_v28  ;;  %4437 = vmatprep.mubr.msk.bf16.mxu0 %vm5175_vm2, %v5174_v12 }
 0x3f4   :  { %4423 = vmatprep.subr.bf16.mxu0 %v5174_v12  ;;  %4456 = vmatpush3.bf16.msra.mxu1 %v5011_v46 }
 0x3f7   :  { %4424 = vmatpush3.bf16.msra.mxu0 %v5000_v32  ;;  %4458 = vmatmul.mubr.bf16.vlgmr.msra.gmra.mrb[28].mxu1 %v3462_v63 }
 0x3f8   :  { %4425 = vmatprep.subr.bf16.mxu0 %v5174_v12 }
 0x3fb   :  { %4426 = vmatpush3.bf16.msra.mxu0 %v5002_v34 }
 0x3fc   :  { %4427 = vmatprep.subr.bf16.mxu0 %v5174_v12 }
 0x3ff   :  { %4428 = vmatpush3.bf16.msra.mxu0 %v5004_v36 }
 0x400   :  { %4429 = vmatprep.subr.bf16.mxu0 %v5174_v12 }
 0x403   :  { %4430 = vmatpush3.bf16.msra.mxu0 %v5006_v38 }
 0x404   :  { %4431 = vmatprep.subr.bf16.mxu0 %v5174_v12 }
 0x407   :  { %4432 = vmatpush3.bf16.msra.mxu0 %v5008_v42 }
 0x408   :  { %4433 = vmatprep.subr.bf16.mxu0 %v5174_v12 }
 0x40b   :  { %4434 = vmatpush3.bf16.msra.mxu0 %v5010_v45 }
 0x40c   :  { %4435 = vmatprep.subr.bf16.mxu0 %v5174_v12 }
 0x40f   :  { %4436 = vmatpush3.bf16.msra.mxu0 %v5012_v47 }
 0x410   :  { %4461 = vmatprep.subr.bf16.mxu0 %v5174_v12 }
 0x412   :  { %4438 = vmatmul.mubr.bf16.vlgmr.msra.gmra.mrb[24].mxu0 %v3350_v8 }
 0x413   :  { %4462 = vmatpush3.bf16.msra.mxu0 %v5015_v5  ;;  %4477 = vmatprep.mubr.msk.bf16.mxu0 %vm5175_vm2, %v5174_v12 }
 0x414   :  { %4463 = vmatprep.subr.bf16.mxu0 %v5174_v12 }
 0x417   :  { %4464 = vmatpush3.bf16.msra.mxu0 %v5016_v41 }
 0x418   :  { %4465 = vmatprep.subr.bf16.mxu0 %v5174_v12 }
 0x41b   :  { %4466 = vmatpush3.bf16.msra.mxu0 %v5017_v40 }
 0x41c   :  { %4467 = vmatprep.subr.bf16.mxu0 %v5174_v12 }
 0x41f   :  { %4468 = vmatpush3.bf16.msra.mxu0 %v5018_v43 }
 0x420   :  { %4469 = vmatprep.subr.bf16.mxu0 %v5174_v12 }
 0x423   :  { %4470 = vmatpush3.bf16.msra.mxu0 %v5019_v9 }
 0x424   :  { %4471 = vmatprep.subr.bf16.mxu0 %v5174_v12 }
 0x427   :  { %4472 = vmatpush3.bf16.msra.mxu0 %v5020_v10 }
 0x428   :  { %4473 = vmatprep.subr.bf16.mxu0 %v5174_v12 }
 0x42b   :  { %4474 = vmatpush3.bf16.msra.mxu0 %v5021_v11 }
 0x42c   :  { %4475 = vmatprep.subr.bf16.mxu0 %v5174_v12 }
 0x42f   :  { %4476 = vmatpush3.bf16.msra.mxu0 %v5022_v14 }
 0x432   :  { %4478 = vmatmul.mubr.bf16.vlgmr.msra.gmra.mrb[28].mxu0 %v3574_v15 }
 0x465   :  { %v4242_v48 = vpop.f32.mrb[8].mxu0 }
 0x466   :  { %v4243_v49 = vpop.f32.mrb[9].mxu0 }
 0x467   :  { %v4245_v0 = vpop.f32.mrb[10].mxu0 }
 0x468   :  { %v4246_v50 = vpop.f32.mrb[11].mxu0 }
 0x46a   :  { %v4286_v51 = vpop.f32.mrb[16].mxu1 }
 0x46b   :  { %v4287_v52 = vpop.f32.mrb[17].mxu1 }
 0x46c   :  { %v4289_v53 = vpop.f32.mrb[18].mxu1 }
 0x46d   :  { %v4290_v54 = vpop.f32.mrb[19].mxu1 }
 0x485   :  { %v4264_v55 = vpop.f32.mrb[12].mxu0 }
 0x486   :  { %v4265_v56 = vpop.f32.mrb[13].mxu0 }
 0x487   :  { %v4267_v57 = vpop.f32.mrb[14].mxu0 }
 0x488   :  { %v4268_v58 = vpop.f32.mrb[15].mxu0 }
 0x48a   :  { %v4330_v59 = vpop.f32.mrb[20].mxu1 }
 0x48b   :  { %v4331_v60 = vpop.f32.mrb[21].mxu1 }
 0x48c   :  { %v4333_v61 = vpop.f32.mrb[22].mxu1 }
 0x48d   :  { %v4334_v62 = vpop.f32.mrb[23].mxu1 }
 0x4a5   :  { %v4308_v1 = vpop.f32.mrb[16].mxu0 }
 0x4a6   :  { %v4309_v2 = vpop.f32.mrb[17].mxu0 }
 0x4a7   :  { %v4311_v3 = vpop.f32.mrb[18].mxu0 }
 0x4a8   :  { %v4312_v4 = vpop.f32.mrb[19].mxu0 }
 0x4aa   :  { %v3323_v18 = vpop.f32.mrb[24].mxu1 }
 0x4ab   :  { %v4419_v21 = vpop.f32.mrb[25].mxu1 }
 0x4ac   :  { %v3326_v23 = vpop.f32.mrb[26].mxu1 }
 0x4ad   :  { %v4420_v24 = vpop.f32.mrb[27].mxu1 }
 0x4c5   :  { %v3235_v16 = vpop.f32.mrb[20].mxu0 }
 0x4c6   :  { %v4399_v17 = vpop.f32.mrb[21].mxu0  ;;  %v3324_v20 = vadd.f32 %v3323_v18, %v3235_v16 }
 0x4c7   :  { %v3238_v19 = vpop.f32.mrb[22].mxu0 }
 0x4c8   :  { %v4400_v22 = vpop.f32.mrb[23].mxu0 }
 0x4ca   :  { %v3546_v25 = vpop.f32.mrb[28].mxu1 }
 0x4cb   :  { %v4459_v26 = vpop.f32.mrb[29].mxu1 }
 0x4cc   :  { %v3549_v28 = vpop.f32.mrb[30].mxu1 }
 0x4cd   :  { %v4460_v31 = vpop.f32.mrb[31].mxu1 }
 0x4e5   :  { %v3434_v27 = vpop.f32.mrb[24].mxu0 }
 0x4e6   :  { %v3440_v29 = vadd.f32 %v3434_v27, %v3324_v20  ;;  %v4439_v30 = vpop.f32.mrb[25].mxu0 }
 0x4e7   :  { %v3437_v12 = vpop.f32.mrb[26].mxu0 }
 0x4e8   :  { %v4440_v32 = vpop.f32.mrb[27].mxu0  ;;  %v3552_v33 = vadd.f32 %v3546_v25, %v3440_v29 }
 0x505   :  { %v3658_v34 = vpop.f32.mrb[28].mxu0 }
 0x506   :  { %v3664_v36 = vadd.f32 %v3658_v34, %v3552_v33  ;;  %v4479_v37 = vpop.f32.mrb[29].mxu0 }
 0x507   :  { %v3661_v38 = vpop.f32.mrb[30].mxu0 }
 0x508   :  { %v3672_v39 = vadd.f32 %v4221_v35, %v3664_v36  ;;  %v4480_v42 = vpop.f32.mrb[31].mxu0 }
 0x50a   :  { %v3673_v44 = vmul.f32 0.2, %v3672_v39 }
 0x50c   :  { %v3674_v45 = vmax.f32 %v3672_v39, %v3673_v44 }
 0x50e   :  { %3676 = vst.msk [vmem:[#allocation17] sm:$0x3] %vm3675_vm3, %v3674_v45 }
 0x50f   :  { %5145 = shalt.err (!%p5142_p2)
}
 0x510   :  { %s5146_s23 = scalar_lea.hbm %s5806_s10, 32 }
 0x511   :  { %p5147_p3 = scmp.ne.s32.totalorder %s5806_s10, %s5146_s23  ;;  %p5150_p4 = scmp.lt.u32.totalorder %s5146_s23, %s5806_s10 }
 0x513   :  { %p5152_p5 = pnand %p5150_p4, %p5147_p3 }
 0x515   :  { %5155 = shalt.err (!%p5152_p5)
}
 0x516   :  { %3686 = dma.vmem_to_hbm [thread:$0]  %s3684_s18, 32, %s5806_s10, [#allocation10]  }
 0x517   :  { %5162 = dma.done.wait [#allocation10], 32  }
 0x518   :  { %5163 = vsyncadd [#allocation10], 4294967264 }
 0x519   :  { %3690 = vsyncpa [#allocation9], 1 }
 0x51a   :  { %3691 = vsyncpa [#allocation12], 1 }
 0x51b   :  { %3692 = vsyncpa [#allocation15], 1 }
 0x51c   :  { %3693 = vsyncpa [#allocation10], 1 }

</bundles_post_ra>
